<compile_context>
chip_gen: v5e
topology: v5e:2x2
jax: 0.10.0
libtpu: 0.0.40
codegen_flags: <defaults>
</compile_context>

<pallas_src>
import functools

import jax
import jax.numpy as jnp
from jax.experimental import pallas as pl
from jax.experimental.pallas import tpu as pltpu


def _round_up(x, m):
    return ((x + m - 1) // m) * m


# ----------------------------------------------------------------------------
# Kernel 1: the serial recurrence.  Per grid step it consumes T_BLK precomputed
# gate activations (x@Wx + b) and produces T_BLK hidden states; h/c are carried
# in the resident h_fin/c_fin output blocks (constant index_map).
# ----------------------------------------------------------------------------
def _lstm_recurrence_kernel(
    xw_ref,       # (T_BLK, B_PAD, 4*H_PAD) f32  : x @ Wx + bias, precomputed
    h0_ref,       # (B_PAD, H_PAD) f32
    c0_ref,       # (B_PAD, H_PAD) f32
    wh_ref,       # (H_PAD, 4*H_PAD) bf16        : resident for the whole grid
    hseq_ref,     # out (T_BLK, B_PAD, H_PAD) f32
    h_fin_ref,    # out (B_PAD, H_PAD) f32       : resident carry
    c_fin_ref,    # out (B_PAD, H_PAD) f32       : resident carry
    *, t_blk, h_pad,
):
    tb = pl.program_id(0)

    # Seed the carry from the initial state on the first block only.
    @pl.when(tb == 0)
    def _():
        h_fin_ref[...] = h0_ref[...]
        c_fin_ref[...] = c0_ref[...]

    wh = wh_ref[...]

    def step(i, carry):
        h, c = carry
        # Only the h-dependent half of the gate projection is in the loop.
        gates = xw_ref[i] + jnp.dot(
            h.astype(wh.dtype), wh, preferred_element_type=jnp.float32)
        f = jax.nn.sigmoid(gates[:, 0 * h_pad:1 * h_pad])
        ig = jax.nn.sigmoid(gates[:, 1 * h_pad:2 * h_pad])
        o = jax.nn.sigmoid(gates[:, 2 * h_pad:3 * h_pad])
        g = jnp.tanh(gates[:, 3 * h_pad:4 * h_pad])
        c_new = f * c + ig * g
        h_new = o * jnp.tanh(c_new)
        hseq_ref[i] = h_new
        return h_new, c_new

    h, c = jax.lax.fori_loop(
        0, t_blk, step, (h_fin_ref[...], c_fin_ref[...]), unroll=True)

    h_fin_ref[...] = h
    c_fin_ref[...] = c


# ----------------------------------------------------------------------------
# Kernel 2: output projection + log-softmax, batched over time (no recurrence,
# time axis marked "parallel").  Padded output lanes are masked via the bias
# (bout padded cols = -1e30), so no iota/where is needed.
# ----------------------------------------------------------------------------
def _output_logsoftmax_kernel(
    hseq_ref,     # (T_BLK, B_PAD, H_PAD) f32
    wout_ref,     # (H_PAD, OUT_PAD) bf16
    bout_ref,     # (1, OUT_PAD) f32 (-1e30 in padded columns)
    out_ref,      # out (T_BLK, B_PAD, OUT_PAD) f32
    *, t_blk, b_pad,
):
    h_pad = hseq_ref.shape[-1]
    out_pad = out_ref.shape[-1]
    h = hseq_ref[...].reshape(t_blk * b_pad, h_pad)
    logits = jnp.dot(
        h.astype(wout_ref.dtype), wout_ref[...],
        preferred_element_type=jnp.float32) + bout_ref[...]
    m = jnp.max(logits, axis=-1, keepdims=True)
    e = jnp.exp(logits - m)                      # padded cols underflow to 0
    lse = jnp.log(jnp.sum(e, axis=-1, keepdims=True)) + m
    out_ref[...] = (logits - lse).reshape(t_blk, b_pad, out_pad)


@functools.partial(
    jax.jit,
    static_argnames=("input_size", "hidden_size", "output_size", "t_blk"),
)
def lstm_sequence(xs, h0, c0, packed, *, input_size, hidden_size, output_size,
                  t_blk=4):
    """Runs the LSTM cell over a sequence.

    xs: (seq, B, input_size), h0/c0: (B, hidden_size).
    Returns (per-step log_softmax outputs (seq, B, output_size), h_T, c_T).
    """
    seq, B, _ = xs.shape
    B_PAD = _round_up(B, 8)
    H_PAD = _round_up(hidden_size, 128)
    OUT_PAD = _round_up(output_size, 128)

    # Pick a T_BLK that divides seq (all static at trace time).
    t_blk = min(t_blk, seq)
    while seq % t_blk:
        t_blk -= 1

    # Pad only the batch dim of xs; feature padding is folded into the hoisted
    # projection below (wx has unpadded K, padded N).
    xs_b = jnp.zeros((seq, B_PAD, input_size), jnp.float32).at[:, :B, :].set(xs)
    h0_p = jnp.zeros((B_PAD, H_PAD), jnp.float32).at[:B, :hidden_size].set(h0)
    c0_p = jnp.zeros((B_PAD, H_PAD), jnp.float32).at[:B, :hidden_size].set(c0)

    # Hoisted, time-parallel input projection (one big GEMM) with the fused
    # 4-gate bias folded in.  This has no dependence on h.
    xw = jnp.einsum("tbi,ij->tbj", xs_b, packed["wx"]) + packed["bg"]

    vmem_cap = 8 * 1024 * 1024  # actual footprint << 1 MiB; never the full core

    # ---- Pass 1: serial recurrence over time blocks -------------------------
    hseq, h_fin, c_fin = pl.pallas_call(
        functools.partial(_lstm_recurrence_kernel, t_blk=t_blk, h_pad=H_PAD),
        grid_spec=pltpu.PrefetchScalarGridSpec(
            num_scalar_prefetch=0,
            grid=(seq // t_blk,),
            in_specs=[
                # T_BLK precomputed gate activations per step
                pl.BlockSpec((t_blk, B_PAD, 4 * H_PAD), lambda tb: (tb, 0, 0)),
                # initial carry (resident)
                pl.BlockSpec((B_PAD, H_PAD), lambda tb: (0, 0)),
                pl.BlockSpec((B_PAD, H_PAD), lambda tb: (0, 0)),
                # recurrent weight (resident in VMEM for the whole grid)
                pl.BlockSpec((H_PAD, 4 * H_PAD), lambda tb: (0, 0)),
            ],
            out_specs=[
                pl.BlockSpec((t_blk, B_PAD, H_PAD), lambda tb: (tb, 0, 0)),
                # carried state: constant index_map -> written to HBM once
                pl.BlockSpec((B_PAD, H_PAD), lambda tb: (0, 0)),
                pl.BlockSpec((B_PAD, H_PAD), lambda tb: (0, 0)),
            ],
        ),
        out_shape=(
            jax.ShapeDtypeStruct((seq, B_PAD, H_PAD), jnp.float32),
            jax.ShapeDtypeStruct((B_PAD, H_PAD), jnp.float32),
            jax.ShapeDtypeStruct((B_PAD, H_PAD), jnp.float32),
        ),
        compiler_params=pltpu.CompilerParams(
            dimension_semantics=("arbitrary",),   # time is a true recurrence
            vmem_limit_bytes=vmem_cap,
        ),
    )(xw, h0_p, c0_p, packed["wh"])

    # ---- Pass 2: output projection + log-softmax, batched over time ---------
    outs = pl.pallas_call(
        functools.partial(_output_logsoftmax_kernel, t_blk=t_blk, b_pad=B_PAD),
        grid_spec=pltpu.PrefetchScalarGridSpec(
            num_scalar_prefetch=0,
            grid=(seq // t_blk,),
            in_specs=[
                pl.BlockSpec((t_blk, B_PAD, H_PAD), lambda tb: (tb, 0, 0)),
                pl.BlockSpec((H_PAD, OUT_PAD), lambda tb: (0, 0)),
                pl.BlockSpec((1, OUT_PAD), lambda tb: (0, 0)),
            ],
            out_specs=pl.BlockSpec((t_blk, B_PAD, OUT_PAD),
                                   lambda tb: (tb, 0, 0)),
        ),
        out_shape=jax.ShapeDtypeStruct((seq, B_PAD, OUT_PAD), jnp.float32),
        compiler_params=pltpu.CompilerParams(
            dimension_semantics=("parallel",),    # steps are independent here
            vmem_limit_bytes=vmem_cap,
        ),
    )(hseq, packed["wout"], packed["bout"])

    return (
        outs[:, :B, :output_size],
        h_fin[:B, :hidden_size],
        c_fin[:B, :hidden_size],
    )


def init_params(key, input_size, hidden_size, output_size):
    """Per-gate params mimicking nn.Linear defaults (uniform +-1/sqrt(fan_in)).

    Each PyTorch Linear weight (out, in) is stored transposed as (in, out) and
    split into its input-part and hidden-part.
    """
    params = {}
    keys = jax.random.split(key, 10)
    in_feat = input_size + hidden_size

    def make_linear(kw, kb, fan_in, fan_out):
        bound = 1.0 / jnp.sqrt(float(fan_in))
        w = jax.random.uniform(kw, (fan_in, fan_out), jnp.float32, -bound, bound)
        b = jax.random.uniform(kb, (1, fan_out), jnp.float32, -bound, bound)
        return w, b

    names = ["f", "i", "o", "c"]
    for n, (kw, kb) in zip(names, zip(keys[:4], keys[4:8])):
        w, b = make_linear(kw, kb, in_feat, hidden_size)
        params[f"w{n}x"] = w[:input_size]
        params[f"w{n}h"] = w[input_size:]
        params[f"b{n}"] = b
    wout, bout = make_linear(keys[8], keys[9], hidden_size, output_size)
    params["wout"] = wout
    params["bout"] = bout
    return params


def pack_params(params, input_size, hidden_size, output_size,
                matmul_dtype=jnp.bfloat16):
    """Fuse the 4 gate Linears along the output dim and pad lane dims to 128.

    wx stays f32 with an UNPADDED K dim (it is consumed by the hoisted XLA
    GEMM, not by the kernel).  wh / wout are stored in `matmul_dtype` (bf16 by
    default) — matmul inputs only; accumulation stays f32.  The padded columns
    of bout carry -1e30 so the in-kernel log-softmax needs no lane mask.
    """
    H_PAD = _round_up(hidden_size, 128)
    OUT_PAD = _round_up(output_size, 128)

    wx = jnp.zeros((input_size, 4 * H_PAD), jnp.float32)
    wh = jnp.zeros((H_PAD, 4 * H_PAD), jnp.float32)
    bg = jnp.zeros((1, 4 * H_PAD), jnp.float32)
    for j, n in enumerate(["f", "i", "o", "c"]):
        c0, c1 = j * H_PAD, j * H_PAD + hidden_size
        wx = wx.at[:, c0:c1].set(params[f"w{n}x"])
        wh = wh.at[:hidden_size, c0:c1].set(params[f"w{n}h"])
        bg = bg.at[:, c0:c1].set(params[f"b{n}"])

    wout = jnp.zeros((H_PAD, OUT_PAD), jnp.float32)
    wout = wout.at[:hidden_size, :output_size].set(params["wout"])
    bout = jnp.full((1, OUT_PAD), -1e30, jnp.float32)
    bout = bout.at[:, :output_size].set(params["bout"])
    return {
        "wx": wx,                              # f32, used by the hoisted GEMM
        "wh": wh.astype(matmul_dtype),         # resident recurrent weight
        "bg": bg,                              # f32, folded into x-projection
        "wout": wout.astype(matmul_dtype),
        "bout": bout,                          # f32, -1e30 in padded columns
    }


def lstm_cell_reference(x, h, c, params):
    """Pure-JAX single-step reference matching the PyTorch forward exactly."""
    combined = jnp.concatenate([x, h], axis=1)

    def lin(n):
        w = jnp.concatenate([params[f"w{n}x"], params[f"w{n}h"]], axis=0)
        return combined @ w + params[f"b{n}"]

    f = jax.nn.sigmoid(lin("f"))
    i = jax.nn.sigmoid(lin("i"))
    o = jax.nn.sigmoid(lin("o"))
    g = jnp.tanh(lin("c"))
    c_new = f * c + i * g
    h_new = o * jnp.tanh(c_new)
    logits = h_new @ params["wout"] + params["bout"]
    out = jax.nn.log_softmax(logits, axis=1)
    return out, h_new, c_new


if __name__ == "__main__":
    input_size, hidden_size, output_size = 16, 32, 8
    batch = 2
    seq = 8

    key = jax.random.PRNGKey(0)
    kp, kx = jax.random.split(key)
    params = init_params(kp, input_size, hidden_size, output_size)
    packed = pack_params(params, input_size, hidden_size, output_size)

    xs = jax.random.normal(kx, (seq, batch, input_size), jnp.float32)
    # initHidden / initCell (batch-broadcast of the zeros(1, H) init)
    h0 = jnp.zeros((batch, hidden_size), jnp.float32)
    c0 = jnp.zeros((batch, hidden_size), jnp.float32)

    outs, h_fin, c_fin = lstm_sequence(
        xs, h0, c0, packed,
        input_size=input_size, hidden_size=hidden_size,
        output_size=output_size, t_blk=4,
    )
    jax.block_until_ready((outs, h_fin, c_fin))

    # Pure-JAX f32 reference, stepped the same way as the PyTorch module.
    h_r, c_r = h0, c0
    outs_r = []
    for t in range(seq):
        o_r, h_r, c_r = lstm_cell_reference(xs[t], h_r, c_r, params)
        outs_r.append(o_r)
    outs_r = jnp.stack(outs_r, axis=0)

    # Tolerance accounts for bf16 matmul inputs (f32 accumulation).
    tol = 5e-2
    assert jnp.allclose(outs, outs_r, atol=tol), "per-step output mismatch"
    assert jnp.allclose(h_fin, h_r, atol=tol), "final hidden mismatch"
    assert jnp.allclose(c_fin, c_r, atol=tol), "final cell mismatch"
    print("KERNEL_OK")
</pallas_src>

<mosaic_0001>
module attributes {stable_mosaic.version = 11 : i64} {
  func.func @_output_logsoftmax_kernel(%arg0: i32, %arg1: memref<4x8x128xf32, #tpu.memory_space<vmem>>, %arg2: memref<128x128xbf16, #tpu.memory_space<vmem>>, %arg3: memref<1x128xf32, #tpu.memory_space<vmem>>, %arg4: memref<4x8x128xf32, #tpu.memory_space<vmem>>) attributes {dimension_semantics = [#tpu.dimension_semantics<parallel>], iteration_bounds = array<i64: 2>, scalar_prefetch = 0 : i64, scratch_operands = 0 : i64, tpu.core_type = #tpu.core_type<tc>, window_params = [{transform_indices = @transform_0, window_bounds = array<i64: 4, 8, 128>}, {pipeline_mode = #tpu.pipeline_mode<synchronous>, transform_indices = @transform_1, window_bounds = array<i64: 128, 128>}, {pipeline_mode = #tpu.pipeline_mode<synchronous>, transform_indices = @transform_2, window_bounds = array<i64: 1, 128>}, {transform_indices = @transform_3, window_bounds = array<i64: 4, 8, 128>}]} {
    %c0 = arith.constant 0 : index
    %c0_0 = arith.constant 0 : index
    %c0_1 = arith.constant 0 : index
    %0 = vector.load %arg1[%c0, %c0_0, %c0_1] : memref<4x8x128xf32, #tpu.memory_space<vmem>>, vector<4x8x128xf32>
    %1 = vector.shape_cast %0 : vector<4x8x128xf32> to vector<32x128xf32>
    %2 = arith.truncf %1 : vector<32x128xf32> to vector<32x128xbf16>
    %c0_2 = arith.constant 0 : index
    %c0_3 = arith.constant 0 : index
    %3 = vector.load %arg2[%c0_2, %c0_3] : memref<128x128xbf16, #tpu.memory_space<vmem>>, vector<128x128xbf16>
    %cst = arith.constant dense<0.000000e+00> : vector<32x128xf32>
    %4 = tpu.matmul %2, %3, %cst {dimension_numbers = #tpu.dot_dimension_numbers<[1], [0], [0], [1], [0, 0, 1, 1], [], []>} : vector<32x128xbf16>, vector<128x128xbf16>, vector<32x128xf32> -> vector<32x128xf32>
    %c0_4 = arith.constant 0 : index
    %c0_5 = arith.constant 0 : index
    %5 = vector.load %arg3[%c0_4, %c0_5] : memref<1x128xf32, #tpu.memory_space<vmem>>, vector<1x128xf32>
    %6 = vector.broadcast %5 : vector<1x128xf32> to vector<32x128xf32>
    %7 = arith.addf %4, %6 : vector<32x128xf32>
    %cst_6 = arith.constant dense<0xFF800000> : vector<32xf32>
    %8 = vector.multi_reduction <maximumf>, %7, %cst_6 [1] : vector<32x128xf32> to vector<32xf32>
    %9 = vector.shape_cast %8 : vector<32xf32> to vector<32x1xf32>
    %10 = vector.broadcast %9 : vector<32x1xf32> to vector<32x128xf32>
    %11 = arith.subf %7, %10 : vector<32x128xf32>
    %12 = math.exp %11 : vector<32x128xf32>
    %cst_7 = arith.constant dense<0.000000e+00> : vector<32xf32>
    %13 = vector.multi_reduction <add>, %12, %cst_7 [1] : vector<32x128xf32> to vector<32xf32>
    %14 = vector.shape_cast %13 : vector<32xf32> to vector<32x1xf32>
    %15 = math.log %14 : vector<32x1xf32>
    %16 = arith.addf %15, %9 : vector<32x1xf32>
    %17 = vector.broadcast %16 : vector<32x1xf32> to vector<32x128xf32>
    %18 = arith.subf %7, %17 : vector<32x128xf32>
    %19 = vector.shape_cast %18 : vector<32x128xf32> to vector<4x8x128xf32>
    %c0_8 = arith.constant 0 : index
    %c0_9 = arith.constant 0 : index
    %c0_10 = arith.constant 0 : index
    %20 = vector.load %arg4[%c0_8, %c0_9, %c0_10] : memref<4x8x128xf32, #tpu.memory_space<vmem>>, vector<4x8x128xf32>
    tpu.vector_store %arg4[%c0_8, %c0_9, %c0_10], %19 {strides = array<i32>} : memref<4x8x128xf32, #tpu.memory_space<vmem>>, vector<4x8x128xf32>,
    return
  }
  func.func @transform_0(%arg0: i32) -> (i32, i32, i32) {
    %c0_i32 = arith.constant 0 : i32
    %c0_i32_0 = arith.constant 0 : i32
    %c0_i32_1 = arith.constant 0 : i32
    return %arg0, %c0_i32, %c0_i32_0 : i32, i32, i32
  }
  func.func @transform_1(%arg0: i32) -> (i32, i32) {
    %c0_i32 = arith.constant 0 : i32
    %c0_i32_0 = arith.constant 0 : i32
    %c0_i32_1 = arith.constant 0 : i32
    return %c0_i32, %c0_i32_0 : i32, i32
  }
  func.func @transform_2(%arg0: i32) -> (i32, i32) {
    %c0_i32 = arith.constant 0 : i32
    %c0_i32_0 = arith.constant 0 : i32
    %c0_i32_1 = arith.constant 0 : i32
    return %c0_i32, %c0_i32_0 : i32, i32
  }
  func.func @transform_3(%arg0: i32) -> (i32, i32, i32) {
    %c0_i32 = arith.constant 0 : i32
    %c0_i32_0 = arith.constant 0 : i32
    %c0_i32_1 = arith.constant 0 : i32
    return %arg0, %c0_i32, %c0_i32_0 : i32, i32, i32
  }
}

module attributes {stable_mosaic.version = 11 : i64} {
  func.func @_lstm_recurrence_kernel(%arg0: i32, %arg1: memref<4x8x512xf32, #tpu.memory_space<vmem>>, %arg2: memref<8x128xf32, #tpu.memory_space<vmem>>, %arg3: memref<8x128xf32, #tpu.memory_space<vmem>>, %arg4: memref<128x512xbf16, #tpu.memory_space<vmem>>, %arg5: memref<4x8x128xf32, #tpu.memory_space<vmem>>, %arg6: memref<8x128xf32, #tpu.memory_space<vmem>>, %arg7: memref<8x128xf32, #tpu.memory_space<vmem>>) attributes {dimension_semantics = [#tpu.dimension_semantics<arbitrary>], iteration_bounds = array<i64: 2>, scalar_prefetch = 0 : i64, scratch_operands = 0 : i64, tpu.core_type = #tpu.core_type<tc>, window_params = [{transform_indices = @transform_0, window_bounds = array<i64: 4, 8, 512>}, {pipeline_mode = #tpu.pipeline_mode<synchronous>, transform_indices = @transform_1, window_bounds = array<i64: 8, 128>}, {pipeline_mode = #tpu.pipeline_mode<synchronous>, transform_indices = @transform_2, window_bounds = array<i64: 8, 128>}, {pipeline_mode = #tpu.pipeline_mode<synchronous>, transform_indices = @transform_3, window_bounds = array<i64: 128, 512>}, {transform_indices = @transform_4, window_bounds = array<i64: 4, 8, 128>}, {pipeline_mode = #tpu.pipeline_mode<synchronous>, transform_indices = @transform_5, window_bounds = array<i64: 8, 128>}, {pipeline_mode = #tpu.pipeline_mode<synchronous>, transform_indices = @transform_6, window_bounds = array<i64: 8, 128>}]} {
    %c0_i32 = arith.constant 0 : i32
    %0 = arith.cmpi eq, %arg0, %c0_i32 : i32
    %1 = arith.extui %0 : i1 to i32
    %c0_i32_0 = arith.constant 0 : i32
    %2 = arith.cmpi ne, %1, %c0_i32_0 : i32
    scf.if %2 {
      %c0_42 = arith.constant 0 : index
      %c0_43 = arith.constant 0 : index
      %148 = vector.load %arg2[%c0_42, %c0_43] : memref<8x128xf32, #tpu.memory_space<vmem>>, vector<8x128xf32>
      %c0_44 = arith.constant 0 : index
      %c0_45 = arith.constant 0 : index
      %149 = vector.load %arg6[%c0_44, %c0_45] : memref<8x128xf32, #tpu.memory_space<vmem>>, vector<8x128xf32>
      tpu.vector_store %arg6[%c0_44, %c0_45], %148 {strides = array<i32>} : memref<8x128xf32, #tpu.memory_space<vmem>>, vector<8x128xf32>,
      %c0_46 = arith.constant 0 : index
      %c0_47 = arith.constant 0 : index
      %150 = vector.load %arg3[%c0_46, %c0_47] : memref<8x128xf32, #tpu.memory_space<vmem>>, vector<8x128xf32>
      %c0_48 = arith.constant 0 : index
      %c0_49 = arith.constant 0 : index
      %151 = vector.load %arg7[%c0_48, %c0_49] : memref<8x128xf32, #tpu.memory_space<vmem>>, vector<8x128xf32>
      tpu.vector_store %arg7[%c0_48, %c0_49], %150 {strides = array<i32>} : memref<8x128xf32, #tpu.memory_space<vmem>>, vector<8x128xf32>,
    } else {
    }
    %c0 = arith.constant 0 : index
    %c0_1 = arith.constant 0 : index
    %3 = vector.load %arg4[%c0, %c0_1] : memref<128x512xbf16, #tpu.memory_space<vmem>>, vector<128x512xbf16>
    %c0_2 = arith.constant 0 : index
    %c0_3 = arith.constant 0 : index
    %4 = vector.load %arg6[%c0_2, %c0_3] : memref<8x128xf32, #tpu.memory_space<vmem>>, vector<8x128xf32>
    %c0_4 = arith.constant 0 : index
    %c0_5 = arith.constant 0 : index
    %5 = vector.load %arg7[%c0_4, %c0_5] : memref<8x128xf32, #tpu.memory_space<vmem>>, vector<8x128xf32>
    %c0_i32_6 = arith.constant 0 : i32
    %6 = arith.index_cast %c0_i32_6 : i32 to index
    %c0_7 = arith.constant 0 : index
    %c0_8 = arith.constant 0 : index
    %7 = vector.load %arg1[%6, %c0_7, %c0_8] : memref<4x8x512xf32, #tpu.memory_space<vmem>>, vector<1x8x512xf32>
    %8 = vector.shape_cast %7 : vector<1x8x512xf32> to vector<8x512xf32>
    %9 = arith.truncf %4 : vector<8x128xf32> to vector<8x128xbf16>
    %cst = arith.constant dense<0.000000e+00> : vector<8x512xf32>
    %10 = tpu.matmul %9, %3, %cst {dimension_numbers = #tpu.dot_dimension_numbers<[1], [0], [0], [1], [0, 0, 1, 1], [], []>} : vector<8x128xbf16>, vector<128x512xbf16>, vector<8x512xf32> -> vector<8x512xf32>
    %11 = arith.addf %8, %10 : vector<8x512xf32>
    %12 = vector.extract_strided_slice %11 {offsets = [0, 0], sizes = [8, 128], strides = [1, 1]} : vector<8x512xf32> to vector<8x128xf32>
    %13 = arith.negf %12 : vector<8x128xf32>
    %14 = math.exp %13 : vector<8x128xf32>
    %cst_9 = arith.constant 1.000000e+00 : f32
    %15 = vector.broadcast %cst_9 : f32 to vector<8x128xf32>
    %16 = arith.addf %15, %14 : vector<8x128xf32>
    %17 = arith.divf %15, %16 : vector<8x128xf32>
    %18 = vector.extract_strided_slice %11 {offsets = [0, 128], sizes = [8, 128], strides = [1, 1]} : vector<8x512xf32> to vector<8x128xf32>
    %19 = arith.negf %18 : vector<8x128xf32>
    %20 = math.exp %19 : vector<8x128xf32>
    %cst_10 = arith.constant 1.000000e+00 : f32
    %21 = vector.broadcast %cst_10 : f32 to vector<8x128xf32>
    %22 = arith.addf %21, %20 : vector<8x128xf32>
    %23 = arith.divf %21, %22 : vector<8x128xf32>
    %24 = vector.extract_strided_slice %11 {offsets = [0, 256], sizes = [8, 128], strides = [1, 1]} : vector<8x512xf32> to vector<8x128xf32>
    %25 = arith.negf %24 : vector<8x128xf32>
    %26 = math.exp %25 : vector<8x128xf32>
    %cst_11 = arith.constant 1.000000e+00 : f32
    %27 = vector.broadcast %cst_11 : f32 to vector<8x128xf32>
    %28 = arith.addf %27, %26 : vector<8x128xf32>
    %29 = arith.divf %27, %28 : vector<8x128xf32>
    %30 = vector.extract_strided_slice %11 {offsets = [0, 384], sizes = [8, 128], strides = [1, 1]} : vector<8x512xf32> to vector<8x128xf32>
    %31 = math.tanh %30 : vector<8x128xf32>
    %32 = arith.mulf %17, %5 : vector<8x128xf32>
    %33 = arith.mulf %23, %31 : vector<8x128xf32>
    %34 = arith.addf %32, %33 : vector<8x128xf32>
    %35 = math.tanh %34 : vector<8x128xf32>
    %36 = arith.mulf %29, %35 : vector<8x128xf32>
    %37 = arith.index_cast %c0_i32_6 : i32 to index
    %c0_12 = arith.constant 0 : index
    %c0_13 = arith.constant 0 : index
    %38 = vector.load %arg5[%37, %c0_12, %c0_13] : memref<4x8x128xf32, #tpu.memory_space<vmem>>, vector<1x8x128xf32>
    %39 = vector.shape_cast %38 : vector<1x8x128xf32> to vector<8x128xf32>
    %40 = vector.shape_cast %36 : vector<8x128xf32> to vector<1x8x128xf32>
    tpu.vector_store %arg5[%37, %c0_12, %c0_13], %40 {strides = array<i32>} : memref<4x8x128xf32, #tpu.memory_space<vmem>>, vector<1x8x128xf32>,
    %c1_i32 = arith.constant 1 : i32
    %41 = arith.index_cast %c1_i32 : i32 to index
    %c0_14 = arith.constant 0 : index
    %c0_15 = arith.constant 0 : index
    %42 = vector.load %arg1[%41, %c0_14, %c0_15] : memref<4x8x512xf32, #tpu.memory_space<vmem>>, vector<1x8x512xf32>
    %43 = vector.shape_cast %42 : vector<1x8x512xf32> to vector<8x512xf32>
    %44 = arith.truncf %36 : vector<8x128xf32> to vector<8x128xbf16>
    %cst_16 = arith.constant dense<0.000000e+00> : vector<8x512xf32>
    %45 = tpu.matmul %44, %3, %cst_16 {dimension_numbers = #tpu.dot_dimension_numbers<[1], [0], [0], [1], [0, 0, 1, 1], [], []>} : vector<8x128xbf16>, vector<128x512xbf16>, vector<8x512xf32> -> vector<8x512xf32>
    %46 = arith.addf %43, %45 : vector<8x512xf32>
    %47 = vector.extract_strided_slice %46 {offsets = [0, 0], sizes = [8, 128], strides = [1, 1]} : vector<8x512xf32> to vector<8x128xf32>
    %48 = arith.negf %47 : vector<8x128xf32>
    %49 = math.exp %48 : vector<8x128xf32>
    %cst_17 = arith.constant 1.000000e+00 : f32
    %50 = vector.broadcast %cst_17 : f32 to vector<8x128xf32>
    %51 = arith.addf %50, %49 : vector<8x128xf32>
    %52 = arith.divf %50, %51 : vector<8x128xf32>
    %53 = vector.extract_strided_slice %46 {offsets = [0, 128], sizes = [8, 128], strides = [1, 1]} : vector<8x512xf32> to vector<8x128xf32>
    %54 = arith.negf %53 : vector<8x128xf32>
    %55 = math.exp %54 : vector<8x128xf32>
    %cst_18 = arith.constant 1.000000e+00 : f32
    %56 = vector.broadcast %cst_18 : f32 to vector<8x128xf32>
    %57 = arith.addf %56, %55 : vector<8x128xf32>
    %58 = arith.divf %56, %57 : vector<8x128xf32>
    %59 = vector.extract_strided_slice %46 {offsets = [0, 256], sizes = [8, 128], strides = [1, 1]} : vector<8x512xf32> to vector<8x128xf32>
    %60 = arith.negf %59 : vector<8x128xf32>
    %61 = math.exp %60 : vector<8x128xf32>
    %cst_19 = arith.constant 1.000000e+00 : f32
    %62 = vector.broadcast %cst_19 : f32 to vector<8x128xf32>
    %63 = arith.addf %62, %61 : vector<8x128xf32>
    %64 = arith.divf %62, %63 : vector<8x128xf32>
    %65 = vector.extract_strided_slice %46 {offsets = [0, 384], sizes = [8, 128], strides = [1, 1]} : vector<8x512xf32> to vector<8x128xf32>
    %66 = math.tanh %65 : vector<8x128xf32>
    %67 = arith.mulf %52, %34 : vector<8x128xf32>
    %68 = arith.mulf %58, %66 : vector<8x128xf32>
    %69 = arith.addf %67, %68 : vector<8x128xf32>
    %70 = math.tanh %69 : vector<8x128xf32>
    %71 = arith.mulf %64, %70 : vector<8x128xf32>
    %72 = arith.index_cast %c1_i32 : i32 to index
    %c0_20 = arith.constant 0 : index
    %c0_21 = arith.constant 0 : index
    %73 = vector.load %arg5[%72, %c0_20, %c0_21] : memref<4x8x128xf32, #tpu.memory_space<vmem>>, vector<1x8x128xf32>
    %74 = vector.shape_cast %73 : vector<1x8x128xf32> to vector<8x128xf32>
    %75 = vector.shape_cast %71 : vector<8x128xf32> to vector<1x8x128xf32>
    tpu.vector_store %arg5[%72, %c0_20, %c0_21], %75 {strides = array<i32>} : memref<4x8x128xf32, #tpu.memory_space<vmem>>, vector<1x8x128xf32>,
    %c2_i32 = arith.constant 2 : i32
    %76 = arith.index_cast %c2_i32 : i32 to index
    %c0_22 = arith.constant 0 : index
    %c0_23 = arith.constant 0 : index
    %77 = vector.load %arg1[%76, %c0_22, %c0_23] : memref<4x8x512xf32, #tpu.memory_space<vmem>>, vector<1x8x512xf32>
    %78 = vector.shape_cast %77 : vector<1x8x512xf32> to vector<8x512xf32>
    %79 = arith.truncf %71 : vector<8x128xf32> to vector<8x128xbf16>
    %cst_24 = arith.constant dense<0.000000e+00> : vector<8x512xf32>
    %80 = tpu.matmul %79, %3, %cst_24 {dimension_numbers = #tpu.dot_dimension_numbers<[1], [0], [0], [1], [0, 0, 1, 1], [], []>} : vector<8x128xbf16>, vector<128x512xbf16>, vector<8x512xf32> -> vector<8x512xf32>
    %81 = arith.addf %78, %80 : vector<8x512xf32>
    %82 = vector.extract_strided_slice %81 {offsets = [0, 0], sizes = [8, 128], strides = [1, 1]} : vector<8x512xf32> to vector<8x128xf32>
    %83 = arith.negf %82 : vector<8x128xf32>
    %84 = math.exp %83 : vector<8x128xf32>
    %cst_25 = arith.constant 1.000000e+00 : f32
    %85 = vector.broadcast %cst_25 : f32 to vector<8x128xf32>
    %86 = arith.addf %85, %84 : vector<8x128xf32>
    %87 = arith.divf %85, %86 : vector<8x128xf32>
    %88 = vector.extract_strided_slice %81 {offsets = [0, 128], sizes = [8, 128], strides = [1, 1]} : vector<8x512xf32> to vector<8x128xf32>
    %89 = arith.negf %88 : vector<8x128xf32>
    %90 = math.exp %89 : vector<8x128xf32>
    %cst_26 = arith.constant 1.000000e+00 : f32
    %91 = vector.broadcast %cst_26 : f32 to vector<8x128xf32>
    %92 = arith.addf %91, %90 : vector<8x128xf32>
    %93 = arith.divf %91, %92 : vector<8x128xf32>
    %94 = vector.extract_strided_slice %81 {offsets = [0, 256], sizes = [8, 128], strides = [1, 1]} : vector<8x512xf32> to vector<8x128xf32>
    %95 = arith.negf %94 : vector<8x128xf32>
    %96 = math.exp %95 : vector<8x128xf32>
    %cst_27 = arith.constant 1.000000e+00 : f32
    %97 = vector.broadcast %cst_27 : f32 to vector<8x128xf32>
    %98 = arith.addf %97, %96 : vector<8x128xf32>
    %99 = arith.divf %97, %98 : vector<8x128xf32>
    %100 = vector.extract_strided_slice %81 {offsets = [0, 384], sizes = [8, 128], strides = [1, 1]} : vector<8x512xf32> to vector<8x128xf32>
    %101 = math.tanh %100 : vector<8x128xf32>
    %102 = arith.mulf %87, %69 : vector<8x128xf32>
    %103 = arith.mulf %93, %101 : vector<8x128xf32>
    %104 = arith.addf %102, %103 : vector<8x128xf32>
    %105 = math.tanh %104 : vector<8x128xf32>
    %106 = arith.mulf %99, %105 : vector<8x128xf32>
    %107 = arith.index_cast %c2_i32 : i32 to index
    %c0_28 = arith.constant 0 : index
    %c0_29 = arith.constant 0 : index
    %108 = vector.load %arg5[%107, %c0_28, %c0_29] : memref<4x8x128xf32, #tpu.memory_space<vmem>>, vector<1x8x128xf32>
    %109 = vector.shape_cast %108 : vector<1x8x128xf32> to vector<8x128xf32>
    %110 = vector.shape_cast %106 : vector<8x128xf32> to vector<1x8x128xf32>
    tpu.vector_store %arg5[%107, %c0_28, %c0_29], %110 {strides = array<i32>} : memref<4x8x128xf32, #tpu.memory_space<vmem>>, vector<1x8x128xf32>,
    %c3_i32 = arith.constant 3 : i32
    %111 = arith.index_cast %c3_i32 : i32 to index
    %c0_30 = arith.constant 0 : index
    %c0_31 = arith.constant 0 : index
    %112 = vector.load %arg1[%111, %c0_30, %c0_31] : memref<4x8x512xf32, #tpu.memory_space<vmem>>, vector<1x8x512xf32>
    %113 = vector.shape_cast %112 : vector<1x8x512xf32> to vector<8x512xf32>
    %114 = arith.truncf %106 : vector<8x128xf32> to vector<8x128xbf16>
    %cst_32 = arith.constant dense<0.000000e+00> : vector<8x512xf32>
    %115 = tpu.matmul %114, %3, %cst_32 {dimension_numbers = #tpu.dot_dimension_numbers<[1], [0], [0], [1], [0, 0, 1, 1], [], []>} : vector<8x128xbf16>, vector<128x512xbf16>, vector<8x512xf32> -> vector<8x512xf32>
    %116 = arith.addf %113, %115 : vector<8x512xf32>
    %117 = vector.extract_strided_slice %116 {offsets = [0, 0], sizes = [8, 128], strides = [1, 1]} : vector<8x512xf32> to vector<8x128xf32>
    %118 = arith.negf %117 : vector<8x128xf32>
    %119 = math.exp %118 : vector<8x128xf32>
    %cst_33 = arith.constant 1.000000e+00 : f32
    %120 = vector.broadcast %cst_33 : f32 to vector<8x128xf32>
    %121 = arith.addf %120, %119 : vector<8x128xf32>
    %122 = arith.divf %120, %121 : vector<8x128xf32>
    %123 = vector.extract_strided_slice %116 {offsets = [0, 128], sizes = [8, 128], strides = [1, 1]} : vector<8x512xf32> to vector<8x128xf32>
    %124 = arith.negf %123 : vector<8x128xf32>
    %125 = math.exp %124 : vector<8x128xf32>
    %cst_34 = arith.constant 1.000000e+00 : f32
    %126 = vector.broadcast %cst_34 : f32 to vector<8x128xf32>
    %127 = arith.addf %126, %125 : vector<8x128xf32>
    %128 = arith.divf %126, %127 : vector<8x128xf32>
    %129 = vector.extract_strided_slice %116 {offsets = [0, 256], sizes = [8, 128], strides = [1, 1]} : vector<8x512xf32> to vector<8x128xf32>
    %130 = arith.negf %129 : vector<8x128xf32>
    %131 = math.exp %130 : vector<8x128xf32>
    %cst_35 = arith.constant 1.000000e+00 : f32
    %132 = vector.broadcast %cst_35 : f32 to vector<8x128xf32>
    %133 = arith.addf %132, %131 : vector<8x128xf32>
    %134 = arith.divf %132, %133 : vector<8x128xf32>
    %135 = vector.extract_strided_slice %116 {offsets = [0, 384], sizes = [8, 128], strides = [1, 1]} : vector<8x512xf32> to vector<8x128xf32>
    %136 = math.tanh %135 : vector<8x128xf32>
    %137 = arith.mulf %122, %104 : vector<8x128xf32>
    %138 = arith.mulf %128, %136 : vector<8x128xf32>
    %139 = arith.addf %137, %138 : vector<8x128xf32>
    %140 = math.tanh %139 : vector<8x128xf32>
    %141 = arith.mulf %134, %140 : vector<8x128xf32>
    %142 = arith.index_cast %c3_i32 : i32 to index
    %c0_36 = arith.constant 0 : index
    %c0_37 = arith.constant 0 : index
    %143 = vector.load %arg5[%142, %c0_36, %c0_37] : memref<4x8x128xf32, #tpu.memory_space<vmem>>, vector<1x8x128xf32>
    %144 = vector.shape_cast %143 : vector<1x8x128xf32> to vector<8x128xf32>
    %145 = vector.shape_cast %141 : vector<8x128xf32> to vector<1x8x128xf32>
    tpu.vector_store %arg5[%142, %c0_36, %c0_37], %145 {strides = array<i32>} : memref<4x8x128xf32, #tpu.memory_space<vmem>>, vector<1x8x128xf32>,
    %c4_i32 = arith.constant 4 : i32
    %c0_38 = arith.constant 0 : index
    %c0_39 = arith.constant 0 : index
    %146 = vector.load %arg6[%c0_38, %c0_39] : memref<8x128xf32, #tpu.memory_space<vmem>>, vector<8x128xf32>
    tpu.vector_store %arg6[%c0_38, %c0_39], %141 {strides = array<i32>} : memref<8x128xf32, #tpu.memory_space<vmem>>, vector<8x128xf32>,
    %c0_40 = arith.constant 0 : index
    %c0_41 = arith.constant 0 : index
    %147 = vector.load %arg7[%c0_40, %c0_41] : memref<8x128xf32, #tpu.memory_space<vmem>>, vector<8x128xf32>
    tpu.vector_store %arg7[%c0_40, %c0_41], %139 {strides = array<i32>} : memref<8x128xf32, #tpu.memory_space<vmem>>, vector<8x128xf32>,
    return
  }
  func.func @transform_0(%arg0: i32) -> (i32, i32, i32) {
    %c0_i32 = arith.constant 0 : i32
    %c0_i32_0 = arith.constant 0 : i32
    %c0_i32_1 = arith.constant 0 : i32
    return %arg0, %c0_i32, %c0_i32_0 : i32, i32, i32
  }
  func.func @transform_1(%arg0: i32) -> (i32, i32) {
    %c0_i32 = arith.constant 0 : i32
    %c0_i32_0 = arith.constant 0 : i32
    %c0_i32_1 = arith.constant 0 : i32
    return %c0_i32, %c0_i32_0 : i32, i32
  }
  func.func @transform_2(%arg0: i32) -> (i32, i32) {
    %c0_i32 = arith.constant 0 : i32
    %c0_i32_0 = arith.constant 0 : i32
    %c0_i32_1 = arith.constant 0 : i32
    return %c0_i32, %c0_i32_0 : i32, i32
  }
  func.func @transform_3(%arg0: i32) -> (i32, i32) {
    %c0_i32 = arith.constant 0 : i32
    %c0_i32_0 = arith.constant 0 : i32
    %c0_i32_1 = arith.constant 0 : i32
    return %c0_i32, %c0_i32_0 : i32, i32
  }
  func.func @transform_4(%arg0: i32) -> (i32, i32, i32) {
    %c0_i32 = arith.constant 0 : i32
    %c0_i32_0 = arith.constant 0 : i32
    %c0_i32_1 = arith.constant 0 : i32
    return %arg0, %c0_i32, %c0_i32_0 : i32, i32, i32
  }
  func.func @transform_5(%arg0: i32) -> (i32, i32) {
    %c0_i32 = arith.constant 0 : i32
    %c0_i32_0 = arith.constant 0 : i32
    %c0_i32_1 = arith.constant 0 : i32
    return %c0_i32, %c0_i32_0 : i32, i32
  }
  func.func @transform_6(%arg0: i32) -> (i32, i32) {
    %c0_i32 = arith.constant 0 : i32
    %c0_i32_0 = arith.constant 0 : i32
    %c0_i32_1 = arith.constant 0 : i32
    return %c0_i32, %c0_i32_0 : i32, i32
  }
}

</mosaic_0001>

<bundles_post_ra>
// kernel: lstm_sequence.3
= control target key start
LH: loop header
LB: loop body
LE: loop exit
PB: predicated region body
PF: predicated region fallthrough
CT: control target
= control target key end

     0   :  { %s483_s12 = smov 0   ;;  %s534_s0 = inlined_call_operand.vmem [shape: f32[8,8,128], index: 0, kind: input, shape index: {}]   ;;  %s535_s1 = inlined_call_operand.vmem [shape: bf16[128,128], index: 1, kind: input, shape index: {}]   ;;  %s536_s2 = inlined_call_operand.vmem [shape: f32[1,128], index: 2, kind: input, shape index: {}]   ;;  %s537_s3 = inlined_call_operand.vmem [shape: f32[8,8,128], index: 3, kind: output, shape index: {}]  }
   0x1 LB: > { %s371_s13 = sadd.s32 4294967295, %s461_s12   ;;  %p375_p0 = scmp.ge.s32.totalorder %s461_s12, 1  ;;  %s461_s12 = sphi %s483_s12, %s13_s12  }
   0x2   : > { %p138_p1 = scmp.lt.s32.totalorder %s461_s12, 3 }
   0x4   : > { %p139_p2 = pnand %p375_p0, %p138_p1 }
   0x5   : > { %s376_s20 = sshll.u32 (!%p139_p2), %s371_s13, 2 }
   0x6   : > { %142 = sbr.rel (%p139_p2) target bundleno = 437 (0x1b5), region = 32  ;;  %p163_p3 = scmp.lt.s32.totalorder (!%p139_p2), %s376_s20, 7 }
   0xb   : > { %v421_v0 = vld [vmem:[%s535_s1 + $0x38] sm:$0xff]  ;;  %v420_v1 = vld [vmem:[%s535_s1 + $0x30] sm:$0xff]  ;;  %v419_v2 = vld [vmem:[%s535_s1 + $0x28] sm:$0xff]  ;;  %s539_s20 = smov (!%p163_p3, %s376_s20), 7 }
   0xc   : > { %248 = vmatpush.bf16.msra.mxu0 %v421_v0  ;;  %422 = vmatpush.bf16.msra.mxu1 %v421_v0  ;;  %v418_v3 = vld [vmem:[%s535_s1 + $0x20] sm:$0xff]  ;;  %v417_v4 = vld [vmem:[%s535_s1 + $0x18] sm:$0xff]  ;;  %v416_v5 = vld [vmem:[%s535_s1 + $0x10] sm:$0xff]  ;;  %s377_s27 = sshll.u32 %s539_s20, 3 }
   0xd   : > { %v415_v6 = vld [vmem:[%s535_s1 + $0x8] sm:$0xff]  ;;  %s166_s5 = scalar_lea.vmem %s534_s0, %s377_s27  ;;  %v414_v7 = vld [vmem:[%s535_s1] sm:$0xff]  ;;  %s172_s13 = scalar_lea.vmem %s537_s3, %s377_s27 }
   0xe   : > { %v174_v8 = vld [vmem:[%s166_s5] sm:$0xff]  ;;  %v175_v9 = vld [vmem:[%s166_s5 + $0x8] sm:$0xff]  ;;  %v176_v10 = vld [vmem:[%s166_s5 + $0x10] sm:$0xff] }
   0xf   : > { %v177_v11 = vld [vmem:[%s166_s5 + $0x18] sm:$0xff]  ;;  %v178_v12 = vpack.c.bf16 %v175_v9, %v174_v8  ;;  %v438_v14 = vld [vmem:[%s536_s2] ss:$0 sm:$0xff] }
  0x10   : > { %249 = vmatpush.bf16.msra.mxu0 %v420_v1  ;;  %423 = vmatpush.bf16.msra.mxu1 %v420_v1  ;;  %v179_v13 = vpack.c.bf16 %v177_v11, %v176_v10 }
  0x14   : > { %250 = vmatpush.bf16.msra.mxu0 %v419_v2  ;;  %424 = vmatpush.bf16.msra.mxu1 %v419_v2 }
  0x18   : > { %251 = vmatpush.bf16.msra.mxu0 %v418_v3  ;;  %425 = vmatpush.bf16.msra.mxu1 %v418_v3 }
  0x1c   : > { %252 = vmatpush.bf16.msra.mxu0 %v417_v4  ;;  %426 = vmatpush.bf16.msra.mxu1 %v417_v4 }
  0x20   : > { %253 = vmatpush.bf16.msra.mxu0 %v416_v5  ;;  %427 = vmatpush.bf16.msra.mxu1 %v416_v5 }
  0x24   : > { %254 = vmatpush.bf16.msra.mxu0 %v415_v6  ;;  %428 = vmatpush.bf16.msra.mxu1 %v415_v6 }
  0x28   : > { %255 = vmatpush.bf16.msra.mxu0 %v414_v7  ;;  %429 = vmatpush.bf16.msra.mxu1 %v414_v7 }
  0x2b   : > { %256 = vmatmul.bf16.vlgmr.msra.gmra.mxu0 %v178_v12  ;;  %261 = vmatmul.bf16.vlgmr.msra.gmra.mxu1 %v179_v13 }
  0xa8   : > { %v257_v15 = vpop.f32.mrf.mxu0  ;;  %v262_v16 = vpop.f32.mrf.mxu1 }
  0xa9   : > { %v258_v17 = vadd.f32 %v438_v14, %v257_v15  ;;  %v263_v18 = vadd.f32 %v438_v14, %v262_v16 }
  0xab   : > { %271 = vmax.xlane.f32.xlu1 %v263_v18  ;;  %267 = vmax.xlane.f32.xlu0 %v258_v17 }
  0xb0   : > { %v259_v19 = vpop.f32.mrf.mxu0  ;;  %v264_v20 = vpop.f32.mrf.mxu1 }
  0xb1   : > { %v260_v21 = vadd.f32 %v438_v14, %v259_v19  ;;  %v265_v22 = vadd.f32 %v438_v14, %v264_v20 }
  0xb3   : > { %273 = vmax.xlane.f32.xlu1 %v265_v22  ;;  %269 = vmax.xlane.f32.xlu0 %v260_v21 }
 0x11e   : > { %v272_v23 = vpop.xlane.xlu1 %271  ;;  %v268_v24 = vpop.xlane.xlu0 %267 }
 0x11f   : > { %v277_v25 = vsub.f32 %v263_v18, %v272_v23  ;;  %v275_v26 = vsub.f32 %v258_v17, %v268_v24 }
 0x121   : > { %v283_v27 = vmul.f32 1.442695, %v277_v25  ;;  %v279_v28 = vmul.f32 1.442695, %v275_v26 }
 0x123   : > { %439 = vpow2.f32 %v283_v27 }
 0x124   : > { %441 = vpow2.f32 %v279_v28 }
 0x126   : > { %v274_v29 = vpop.xlane.xlu1 %273  ;;  %v270_v30 = vpop.xlane.xlu0 %269 }
 0x127   : > { %v278_v31 = vsub.f32 %v265_v22, %v274_v29  ;;  %v276_v32 = vsub.f32 %v260_v21, %v270_v30 }
 0x129   : > { %v440_v33 = vpop.eup %439  ;;  %v285_v34 = vmul.f32 1.442695, %v278_v31  ;;  %v281_v35 = vmul.f32 1.442695, %v276_v32 }
 0x12a   : > { %v442_v36 = vpop.eup %441  ;;  %291 = vadd.xlane.f32.xlu0 %v440_v33 }
 0x12b   : > { %443 = vpow2.f32 %v285_v34  ;;  %287 = vadd.xlane.f32.xlu2 %v442_v36 }
 0x12c   : > { %445 = vpow2.f32 %v281_v35 }
 0x131   : > { %v444_v37 = vpop.eup %443 }
 0x132   : > { %v446_v38 = vpop.eup %445  ;;  %293 = vadd.xlane.f32.xlu1 %v444_v37 }
 0x133   : > { %289 = vadd.xlane.f32.xlu2 %v446_v38 }
 0x19d   : > { %v292_v40 = vpop.xlane.xlu0 %291 }
 0x19e   : > { %v288_v39 = vpop.xlane.xlu2 %287 }
 0x19f   : > { %447 = vlog2.f32 %v288_v39 }
 0x1a0   : > { %449 = vlog2.f32 %v292_v40 }
 0x1a5   : > { %v448_v41 = vpop.eup %447  ;;  %v294_v42 = vpop.xlane.xlu1 %293 }
 0x1a6   : > { %v296_v43 = vmul.f32 0.6931472, %v448_v41  ;;  %451 = vlog2.f32 %v294_v42  ;;  %v290_v44 = vpop.xlane.xlu2 %289  ;;  %v450_v45 = vpop.eup %449 }
 0x1a7   : > { %453 = vlog2.f32 %v290_v44  ;;  %v300_v48 = vmul.f32 0.6931472, %v450_v45 }
 0x1a8   : > { %v303_v46 = vadd.f32 %v296_v43, %v268_v24 }
 0x1a9   : > { %v305_v53 = vadd.f32 %v300_v48, %v272_v23 }
 0x1aa   : > { %v307_v47 = vsub.f32 %v258_v17, %v303_v46 }
 0x1ab   : > { %v309_v57 = vsub.f32 %v263_v18, %v305_v53 }
 0x1ac   : > { %v452_v49 = vpop.eup %451  ;;  %311 = vst [vmem:[%s172_s13] sm:$0xff] %v307_v47 }
 0x1ad   : > { %v454_v50 = vpop.eup %453  ;;  %v302_v51 = vmul.f32 0.6931472, %v452_v49  ;;  %313 = vst [vmem:[%s172_s13 + $0x10] sm:$0xff] %v309_v57 }
 0x1ae   : > { %v298_v52 = vmul.f32 0.6931472, %v454_v50 }
 0x1af   : > { %v306_v54 = vadd.f32 %v302_v51, %v274_v29 }
 0x1b0   : > { %v304_v55 = vadd.f32 %v298_v52, %v270_v30 }
 0x1b1   : > { %v310_v58 = vsub.f32 %v265_v22, %v306_v54 }
 0x1b2   : > { %v308_v56 = vsub.f32 %v260_v21, %v304_v55 }
 0x1b3   : > { %314 = vst [vmem:[%s172_s13 + $0x18] sm:$0xff] %v310_v58 }
 0x1b4   : > { %312 = vst [vmem:[%s172_s13 + $0x8] sm:$0xff] %v308_v56 }
 0x1b5 PF: > { %s13_s12 = sadd.s32 1, %s461_s12  }
 0x1b6   : > { %p10_p4 = scmp.ge.s32.totalorder %s13_s12, 4  }
 0x1b8   :  { %12 = sbr.rel (!%p10_p4) target bundleno = 1 (0x1), region = 62 }

// kernel: lstm_sequence.2
= control target key start
LH: loop header
LB: loop body
LE: loop exit
PB: predicated region body
PF: predicated region fallthrough
CT: control target
= control target key end

     0   :  { %s1347_s21 = smov 0   ;;  %s1808_s0 = inlined_call_operand.vmem [shape: f32[8,8,512], index: 0, kind: input, shape index: {}]   ;;  %s1809_s1 = inlined_call_operand.vmem [shape: f32[8,128], index: 1, kind: input, shape index: {}]   ;;  %s1810_s2 = inlined_call_operand.vmem [shape: f32[8,128], index: 2, kind: input, shape index: {}]   ;;  %s1811_s3 = inlined_call_operand.vmem [shape: bf16[128,512], index: 3, kind: input, shape index: {}]   ;;  %s1812_s4 = inlined_call_operand.vmem [shape: f32[8,8,128], index: 4, kind: output, shape index: {0}]   ;;  %s1813_s5 = inlined_call_operand.vmem [shape: f32[8,128], index: 5, kind: output, shape index: {1}]   ;;  %s1814_s6 = inlined_call_operand.vmem [shape: f32[8,128], index: 6, kind: output, shape index: {2}]  }
   0x1 LB: > { %s1031_s22 = sadd.s32 4294967295, %s1310_s21   ;;  %p1035_p0 = scmp.ge.s32.totalorder %s1310_s21, 1  ;;  %s1310_s21 = sphi %s1347_s21, %s17_s21  }
   0x2   : > { %p209_p1 = scmp.lt.s32.totalorder %s1310_s21, 3 }
   0x4   : > { %p210_p2 = pnand %p1035_p0, %p209_p1 }
   0x5   : > { %s1036_s23 = sshll.u32 (!%p210_p2), %s1031_s22, 2  ;;  %p1041_p4 = scmp.ne.s32.totalorder (!%p210_p2), %s1031_s22, 0 }
   0x6   : > { %213 = sbr.rel (%p210_p2) target bundleno = 742 (0x2e6), region = 36  ;;  %p241_p3 = scmp.lt.s32.totalorder (!%p210_p2), %s1036_s23, 7 }
   0xb   : > { %s1816_s23 = smov (!%p241_p3, %s1036_s23), 7  ;;  %256 = sbr.rel (%p1041_p4) target bundleno = 19 (0x13), region = 40 }
   0xc   : > { %s1199_s24 = sshll.u32 %s1816_s23, 5  ;;  %s1040_s25 = sshll.u32 %s1816_s23, 3 }
   0xd   : > { %s1358_s28 = scalar_lea.vmem %s1808_s0, %s1199_s24  ;;  %s1363_s7 = scalar_lea.vmem %s1812_s4, %s1040_s25 }
  0x10   : > { %v257_v0 = vld [vmem:[%s1809_s1] sm:$0xff] }
  0x11   : > { %v259_v1 = vld [vmem:[%s1810_s2] sm:$0xff]  ;;  %258 = vst [vmem:[%s1813_s5] sm:$0xff] %v257_v0 }
  0x12   : > { %260 = vst [vmem:[%s1814_s6] sm:$0xff] %v259_v1 }
  0x13 PF: > { %v1156_v2 = vld [vmem:[%s1811_s3 + $0xe0] sm:$0xf]  ;;  %v1230_v3 = vld [vmem:[%s1811_s3 + $0xec] sm:$0xf0]  ;;  %v1228_v4 = vld [vmem:[%s1811_s3 + $0xe4] sm:$0xf] }
  0x14   : > { %v1386_v5 = vor.u32 %v1230_v3, %v1156_v2  ;;  %v1158_v6 = vld [vmem:[%s1811_s3 + $0xf0] sm:$0xf0]  ;;  %v1164_v7 = vld [vmem:[%s1811_s3 + $0xe8] sm:$0xf]  ;;  %v1231_v8 = vld [vmem:[%s1811_s3 + $0xf4] sm:$0xf0] }
  0x15   : > { %v1397_v9 = vor.u32 %v1228_v4, %v1158_v6  ;;  %v1399_v10 = vor.u32 %v1231_v8, %v1164_v7  ;;  %v1140_v11 = vld [vmem:[%s1811_s3 + $0xc0] sm:$0xf]  ;;  %v1226_v12 = vld [vmem:[%s1811_s3 + $0xcc] sm:$0xf0]  ;;  %v1224_v13 = vld [vmem:[%s1811_s3 + $0xc4] sm:$0xf] }
  0x16   : > { %460 = vmatpush.bf16.msra.mxu0 %v1386_v5  ;;  %v1411_v14 = vor.u32 %v1226_v12, %v1140_v11  ;;  %v1142_v15 = vld [vmem:[%s1811_s3 + $0xd0] sm:$0xf0]  ;;  %v1148_v16 = vld [vmem:[%s1811_s3 + $0xc8] sm:$0xf]  ;;  %v1227_v17 = vld [vmem:[%s1811_s3 + $0xd4] sm:$0xf0] }
  0x17   : > { %473 = vmatpush.bf16.msra.mxu1 %v1397_v9  ;;  %486 = vmatpush.bf16.msra.mxu2 %v1399_v10  ;;  %v1424_v18 = vor.u32 %v1224_v13, %v1142_v15  ;;  %v1426_v19 = vor.u32 %v1227_v17, %v1148_v16  ;;  %v1229_v20 = vld [vmem:[%s1811_s3 + $0xec] sm:$0xf]  ;;  %v1166_v21 = vld [vmem:[%s1811_s3 + $0xf8] sm:$0xf0]  ;;  %v1124_v22 = vld [vmem:[%s1811_s3 + $0xa0] sm:$0xf] }
  0x18   : > { %v1437_v23 = vor.u32 %v1229_v20, %v1166_v21  ;;  %v1222_v24 = vld [vmem:[%s1811_s3 + $0xac] sm:$0xf0]  ;;  %v1220_v25 = vld [vmem:[%s1811_s3 + $0xa4] sm:$0xf]  ;;  %v1126_v26 = vld [vmem:[%s1811_s3 + $0xb0] sm:$0xf0] }
  0x19   : > { %v1132_v27 = vld [vmem:[%s1811_s3 + $0xa8] sm:$0xf]  ;;  %v1223_v28 = vld [vmem:[%s1811_s3 + $0xb4] sm:$0xf0]  ;;  %v1225_v29 = vld [vmem:[%s1811_s3 + $0xcc] sm:$0xf]  ;;  %v1459_v30 = vor.u32 %v1222_v24, %v1124_v22  ;;  %v1472_v34 = vor.u32 %v1220_v25, %v1126_v26 }
  0x1a   : > { %461 = vmatpush.bf16.msra.mxu0 %v1411_v14  ;;  %499 = vmatpush.bf16.msra.mxu3 %v1437_v23  ;;  %v1150_v31 = vld [vmem:[%s1811_s3 + $0xd8] sm:$0xf0]  ;;  %v1108_v32 = vld [vmem:[%s1811_s3 + $0x80] sm:$0xf]  ;;  %v1218_v33 = vld [vmem:[%s1811_s3 + $0x8c] sm:$0xf0]  ;;  %v1474_v35 = vor.u32 %v1223_v28, %v1132_v27 }
  0x1b   : > { %474 = vmatpush.bf16.msra.mxu1 %v1424_v18  ;;  %487 = vmatpush.bf16.msra.mxu2 %v1426_v19  ;;  %v1476_v36 = vor.u32 %v1225_v29, %v1150_v31  ;;  %v1216_v37 = vld [vmem:[%s1811_s3 + $0x84] sm:$0xf]  ;;  %v1110_v38 = vld [vmem:[%s1811_s3 + $0x90] sm:$0xf0]  ;;  %v1116_v39 = vld [vmem:[%s1811_s3 + $0x88] sm:$0xf]  ;;  %v1498_v43 = vor.u32 %v1218_v33, %v1108_v32 }
  0x1c   : > { %v1219_v40 = vld [vmem:[%s1811_s3 + $0x94] sm:$0xf0]  ;;  %v1221_v41 = vld [vmem:[%s1811_s3 + $0xac] sm:$0xf]  ;;  %v1134_v42 = vld [vmem:[%s1811_s3 + $0xb8] sm:$0xf0]  ;;  %v1510_v47 = vor.u32 %v1216_v37, %v1110_v38 }
  0x1d   : > { %v1500_v44 = vor.u32 %v1221_v41, %v1134_v42  ;;  %v1092_v45 = vld [vmem:[%s1811_s3 + $0x60] sm:$0xf]  ;;  %v1214_v46 = vld [vmem:[%s1811_s3 + $0x6c] sm:$0xf0]  ;;  %v1512_v48 = vor.u32 %v1219_v40, %v1116_v39  ;;  %v1212_v49 = vld [vmem:[%s1811_s3 + $0x64] sm:$0xf] }
  0x1e   : > { %462 = vmatpush.bf16.msra.mxu0 %v1459_v30  ;;  %500 = vmatpush.bf16.msra.mxu3 %v1476_v36  ;;  %v1217_v50 = vld [vmem:[%s1811_s3 + $0x8c] sm:$0xf]  ;;  %v1118_v51 = vld [vmem:[%s1811_s3 + $0x98] sm:$0xf0]  ;;  %v1094_v52 = vld [vmem:[%s1811_s3 + $0x70] sm:$0xf0]  ;;  %v1534_v55 = vor.u32 %v1214_v46, %v1092_v45 }
  0x1f   : > { %475 = vmatpush.bf16.msra.mxu1 %v1472_v34  ;;  %488 = vmatpush.bf16.msra.mxu2 %v1474_v35  ;;  %v1100_v53 = vld [vmem:[%s1811_s3 + $0x68] sm:$0xf]  ;;  %v1215_v54 = vld [vmem:[%s1811_s3 + $0x74] sm:$0xf0]  ;;  %v1536_v56 = vor.u32 %v1217_v50, %v1118_v51  ;;  %v1076_v57 = vld [vmem:[%s1811_s3 + $0x40] sm:$0xf]  ;;  %v1546_v59 = vor.u32 %v1212_v49, %v1094_v52 }
  0x20   : > { %v1210_v58 = vld [vmem:[%s1811_s3 + $0x4c] sm:$0xf0]  ;;  %v1548_v60 = vor.u32 %v1215_v54, %v1100_v53  ;;  %v1208_v61 = vld [vmem:[%s1811_s3 + $0x44] sm:$0xf]  ;;  %v1213_v62 = vld [vmem:[%s1811_s3 + $0x6c] sm:$0xf] }
  0x21   : > { %v1102_v63 = vld [vmem:[%s1811_s3 + $0x78] sm:$0xf0]  ;;  %v1078_v0 = vld [vmem:[%s1811_s3 + $0x50] sm:$0xf0]  ;;  %v1084_v1 = vld [vmem:[%s1811_s3 + $0x48] sm:$0xf]  ;;  %v1570_v3 = vor.u32 %v1210_v58, %v1076_v57 }
  0x22   : > { %463 = vmatpush.bf16.msra.mxu0 %v1498_v43  ;;  %501 = vmatpush.bf16.msra.mxu3 %v1500_v44  ;;  %v1211_v2 = vld [vmem:[%s1811_s3 + $0x54] sm:$0xf0]  ;;  %v1572_v4 = vor.u32 %v1213_v62, %v1102_v63  ;;  %v1060_v6 = vld [vmem:[%s1811_s3 + $0x20] sm:$0xf]  ;;  %v1206_v7 = vld [vmem:[%s1811_s3 + $0x2c] sm:$0xf0]  ;;  %v1582_v8 = vor.u32 %v1208_v61, %v1078_v0 }
  0x23   : > { %476 = vmatpush.bf16.msra.mxu1 %v1510_v47  ;;  %489 = vmatpush.bf16.msra.mxu2 %v1512_v48  ;;  %v1584_v11 = vor.u32 %v1211_v2, %v1084_v1  ;;  %v1204_v12 = vld [vmem:[%s1811_s3 + $0x24] sm:$0xf]  ;;  %v1209_v13 = vld [vmem:[%s1811_s3 + $0x4c] sm:$0xf]  ;;  %v1086_v15 = vld [vmem:[%s1811_s3 + $0x58] sm:$0xf0]  ;;  %v1606_v21 = vor.u32 %v1206_v7, %v1060_v6 }
  0x24   : > { %v1062_v16 = vld [vmem:[%s1811_s3 + $0x30] sm:$0xf0]  ;;  %v1068_v17 = vld [vmem:[%s1811_s3 + $0x28] sm:$0xf]  ;;  %v1207_v20 = vld [vmem:[%s1811_s3 + $0x34] sm:$0xf0]  ;;  %v1608_v22 = vor.u32 %v1209_v13, %v1086_v15 }
  0x25   : > { %v1044_v24 = vld [vmem:[%s1811_s3] sm:$0xf]  ;;  %v1202_v25 = vld [vmem:[%s1811_s3 + $0xc] sm:$0xf0]  ;;  %v1618_v26 = vor.u32 %v1204_v12, %v1062_v16  ;;  %v1620_v27 = vor.u32 %v1207_v20, %v1068_v17  ;;  %v1200_v28 = vld [vmem:[%s1811_s3 + $0x4] sm:$0xf] }
  0x26   : > { %464 = vmatpush.bf16.msra.mxu0 %v1534_v55  ;;  %502 = vmatpush.bf16.msra.mxu3 %v1536_v56  ;;  %v1205_v29 = vld [vmem:[%s1811_s3 + $0x2c] sm:$0xf]  ;;  %v1070_v31 = vld [vmem:[%s1811_s3 + $0x38] sm:$0xf0]  ;;  %v1046_v32 = vld [vmem:[%s1811_s3 + $0x10] sm:$0xf0]  ;;  %v1642_v38 = vor.u32 %v1202_v25, %v1044_v24 }
  0x27   : > { %477 = vmatpush.bf16.msra.mxu1 %v1546_v59  ;;  %490 = vmatpush.bf16.msra.mxu2 %v1548_v60  ;;  %v1052_v33 = vld [vmem:[%s1811_s3 + $0x8] sm:$0xf]  ;;  %v1203_v37 = vld [vmem:[%s1811_s3 + $0x14] sm:$0xf0]  ;;  %v293_v39 = vld [vmem:[%s1813_s5] sm:$0xff]  ;;  %v1647_v40 = vor.u32 %v1205_v29, %v1070_v31  ;;  %v1651_v41 = vor.u32 %v1200_v28, %v1046_v32 }
  0x28   : > { %v1653_v42 = vor.u32 %v1203_v37, %v1052_v33  ;;  %v1201_v45 = vld [vmem:[%s1811_s3 + $0xc] sm:$0xf]  ;;  %v1054_v46 = vld [vmem:[%s1811_s3 + $0x18] sm:$0xf0]  ;;  %v299_v49 = vpack.c.bf16 %v293_v39, %v293_v39  ;;  %v295_v51 = vld [vmem:[%s1358_s28] sm:$0xff] }
  0x29   : > { %v1665_v50 = vor.u32 %v1201_v45, %v1054_v46  ;;  %v296_v52 = vld [vmem:[%s1358_s28 + $0x8] sm:$0xff]  ;;  %v297_v63 = vld [vmem:[%s1358_s28 + $0x10] sm:$0xff]  ;;  %v298_v24 = vld [vmem:[%s1358_s28 + $0x18] sm:$0xff] }
  0x2a   : > { %465 = vmatpush.bf16.msra.mxu0 %v1570_v3  ;;  %503 = vmatpush.bf16.msra.mxu3 %v1572_v4 }
  0x2b   : > { %478 = vmatpush.bf16.msra.mxu1 %v1582_v8  ;;  %491 = vmatpush.bf16.msra.mxu2 %v1584_v11 }
  0x2e   : > { %466 = vmatpush.bf16.msra.mxu0 %v1606_v21  ;;  %504 = vmatpush.bf16.msra.mxu3 %v1608_v22 }
  0x2f   : > { %479 = vmatpush.bf16.msra.mxu1 %v1618_v26  ;;  %492 = vmatpush.bf16.msra.mxu2 %v1620_v27 }
  0x32   : > { %467 = vmatpush.bf16.msra.mxu0 %v1642_v38  ;;  %505 = vmatpush.bf16.msra.mxu3 %v1647_v40 }
  0x33   : > { %480 = vmatpush.bf16.msra.mxu1 %v1651_v41  ;;  %493 = vmatpush.bf16.msra.mxu2 %v1653_v42 }
  0x35   : > { %468 = vmatmul.bf16.vlgmr.msra.gmra.mxu0 %v299_v49 }
  0x36   : > { %586 = vmatpush.bf16.msrb.mxu0 %v1386_v5  ;;  %481 = vmatmul.bf16.vlgmr.msra.gmra.mxu1 %v299_v49 }
  0x37   : > { %599 = vmatpush.bf16.msrb.mxu1 %v1397_v9  ;;  %612 = vmatpush.bf16.msrb.mxu2 %v1399_v10 }
  0x38   : > { %494 = vmatmul.bf16.vlgmr.msra.gmra.mxu2 %v299_v49  ;;  %506 = vmatpush.bf16.msra.mxu3 %v1665_v50 }
  0x3a   : > { %587 = vmatpush.bf16.msrb.mxu0 %v1411_v14 }
  0x3b   : > { %600 = vmatpush.bf16.msrb.mxu1 %v1424_v18  ;;  %613 = vmatpush.bf16.msrb.mxu2 %v1426_v19 }
  0x3c   : > { %625 = vmatpush.bf16.msrb.mxu3 %v1437_v23 }
  0x3d   : > { %507 = vmatmul.bf16.vlgmr.msra.gmra.mxu3 %v299_v49 }
  0x3e   : > { %588 = vmatpush.bf16.msrb.mxu0 %v1459_v30 }
  0x3f   : > { %601 = vmatpush.bf16.msrb.mxu1 %v1472_v34  ;;  %614 = vmatpush.bf16.msrb.mxu2 %v1474_v35 }
  0x40   : > { %626 = vmatpush.bf16.msrb.mxu3 %v1476_v36 }
  0x42   : > { %589 = vmatpush.bf16.msrb.mxu0 %v1498_v43 }
  0x43   : > { %602 = vmatpush.bf16.msrb.mxu1 %v1510_v47  ;;  %615 = vmatpush.bf16.msrb.mxu2 %v1512_v48 }
  0x44   : > { %627 = vmatpush.bf16.msrb.mxu3 %v1500_v44 }
  0x46   : > { %590 = vmatpush.bf16.msrb.mxu0 %v1534_v55 }
  0x47   : > { %603 = vmatpush.bf16.msrb.mxu1 %v1546_v59  ;;  %616 = vmatpush.bf16.msrb.mxu2 %v1548_v60 }
  0x48   : > { %628 = vmatpush.bf16.msrb.mxu3 %v1536_v56 }
  0x4a   : > { %591 = vmatpush.bf16.msrb.mxu0 %v1570_v3 }
  0x4b   : > { %604 = vmatpush.bf16.msrb.mxu1 %v1582_v8  ;;  %617 = vmatpush.bf16.msrb.mxu2 %v1584_v11 }
  0x4c   : > { %629 = vmatpush.bf16.msrb.mxu3 %v1572_v4 }
  0x4e   : > { %592 = vmatpush.bf16.msrb.mxu0 %v1606_v21 }
  0x4f   : > { %605 = vmatpush.bf16.msrb.mxu1 %v1618_v26  ;;  %618 = vmatpush.bf16.msrb.mxu2 %v1620_v27 }
  0x50   : > { %630 = vmatpush.bf16.msrb.mxu3 %v1608_v22 }
  0x52   : > { %593 = vmatpush.bf16.msrb.mxu0 %v1642_v38 }
  0x53   : > { %606 = vmatpush.bf16.msrb.mxu1 %v1651_v41  ;;  %619 = vmatpush.bf16.msrb.mxu2 %v1653_v42 }
  0x54   : > { %631 = vmatpush.bf16.msrb.mxu3 %v1647_v40 }
  0x56   : > { %713 = vmatpush.bf16.msra.mxu0 %v1386_v5 }
  0x57   : > { %726 = vmatpush.bf16.msra.mxu1 %v1397_v9  ;;  %739 = vmatpush.bf16.msra.mxu2 %v1399_v10 }
  0x58   : > { %632 = vmatpush.bf16.msrb.mxu3 %v1665_v50 }
  0x5a   : > { %714 = vmatpush.bf16.msra.mxu0 %v1411_v14 }
  0x5b   : > { %727 = vmatpush.bf16.msra.mxu1 %v1424_v18  ;;  %740 = vmatpush.bf16.msra.mxu2 %v1426_v19 }
  0x5c   : > { %752 = vmatpush.bf16.msra.mxu3 %v1437_v23 }
  0x5e   : > { %715 = vmatpush.bf16.msra.mxu0 %v1459_v30 }
  0x5f   : > { %728 = vmatpush.bf16.msra.mxu1 %v1472_v34  ;;  %741 = vmatpush.bf16.msra.mxu2 %v1474_v35 }
  0x60   : > { %753 = vmatpush.bf16.msra.mxu3 %v1476_v36 }
  0x62   : > { %716 = vmatpush.bf16.msra.mxu0 %v1498_v43 }
  0x63   : > { %729 = vmatpush.bf16.msra.mxu1 %v1510_v47  ;;  %742 = vmatpush.bf16.msra.mxu2 %v1512_v48 }
  0x64   : > { %754 = vmatpush.bf16.msra.mxu3 %v1500_v44 }
  0x66   : > { %717 = vmatpush.bf16.msra.mxu0 %v1534_v55 }
  0x67   : > { %730 = vmatpush.bf16.msra.mxu1 %v1546_v59  ;;  %743 = vmatpush.bf16.msra.mxu2 %v1548_v60 }
  0x68   : > { %755 = vmatpush.bf16.msra.mxu3 %v1536_v56 }
  0x6a   : > { %718 = vmatpush.bf16.msra.mxu0 %v1570_v3 }
  0x6b   : > { %731 = vmatpush.bf16.msra.mxu1 %v1582_v8  ;;  %744 = vmatpush.bf16.msra.mxu2 %v1584_v11 }
  0x6c   : > { %756 = vmatpush.bf16.msra.mxu3 %v1572_v4 }
  0x6e   : > { %719 = vmatpush.bf16.msra.mxu0 %v1606_v21 }
  0x6f   : > { %732 = vmatpush.bf16.msra.mxu1 %v1618_v26  ;;  %745 = vmatpush.bf16.msra.mxu2 %v1620_v27 }
  0x70   : > { %757 = vmatpush.bf16.msra.mxu3 %v1608_v22 }
  0x72   : > { %720 = vmatpush.bf16.msra.mxu0 %v1642_v38 }
  0x73   : > { %733 = vmatpush.bf16.msra.mxu1 %v1651_v41  ;;  %746 = vmatpush.bf16.msra.mxu2 %v1653_v42 }
  0x74   : > { %758 = vmatpush.bf16.msra.mxu3 %v1647_v40 }
  0x78   : > { %759 = vmatpush.bf16.msra.mxu3 %v1665_v50 }
  0xb2   : > { %v469_v53 = vpop.f32.mrf.mxu0 }
  0xb3   : > { %v512_v54 = vadd.f32 %v469_v53, %v295_v51  ;;  %v482_v57 = vpop.f32.mrf.mxu1 }
  0xb4   : > { %v513_v58 = vadd.f32 %v482_v57, %v296_v52 }
  0xb5   : > { %v1170_v61 = vmul.f32 -1.442695, %v512_v54 }
  0xb6   : > { %v1171_v62 = vmul.f32 -1.442695, %v513_v58 }
  0xb7   : > { %1240 = vpow2.f32 %v1170_v61 }
  0xb8   : > { %1242 = vpow2.f32 %v1171_v62 }
  0xba   : > { %v471_v2 = vpop.f32.mrf.mxu0 }
  0xbb   : > { %v495_v0 = vpop.f32.mrf.mxu2  ;;  %v484_v6 = vpop.f32.mrf.mxu1 }
  0xbc   : > { %v514_v1 = vadd.f32 %v495_v0, %v297_v63  ;;  %v294_v0 = vld [vmem:[%s1814_s6] sm:$0xff] }
  0xbd   : > { %v1241_v12 = vpop.eup %1240 }
  0xbe   : > { %v1172_v7 = vmul.f32 -1.442695, %v514_v1  ;;  %v1243_v15 = vpop.eup %1242  ;;  %v519_v16 = vadd.f32 1.0, %v1241_v12 }
  0xbf   : > { %v538_v17 = vadd.f32 1.0, %v1243_v15 }
  0xc0   : > { %v508_v13 = vpop.f32.mrf.mxu3  ;;  %1244 = vpow2.f32 %v1172_v7  ;;  %v531_v46 = vand.u32 2147483648, %v519_v16  ;;  %v529_v52 = vand.u32 2147483647, %v519_v16  ;;  %vm525_vm2 = vweird.f32 %v519_v16 }
  0xc1   : > { %1246 = vrcp.f32 %v519_v16  ;;  %v515_v29 = vadd.f32 %v508_v13, %v298_v24  ;;  %v550_v53 = vand.u32 2147483648, %v538_v17  ;;  %v548_v57 = vand.u32 2147483647, %v538_v17 }
  0xc2   : > { %1248 = vrcp.f32 %v538_v17  ;;  %v532_v62 = vor.u32 1.1754944e-38, %v531_v46  ;;  %vm544_vm4 = vweird.f32 %v538_v17  ;;  %vm530_vm5 = vcmp.eq.f32.partialorder %v529_v52, 8.507059e+37 }
  0xc3   : > { %v497_v20 = vpop.f32.mrf.mxu2  ;;  %v551_v7 = vor.u32 1.1754944e-38, %v550_v53  ;;  %vm549_vm7 = vcmp.eq.f32.partialorder %v548_v57, 8.507059e+37 }
  0xc6   : > { %v1245_v25 = vpop.eup %1244 }
  0xc7   : > { %v557_v28 = vadd.f32 1.0, %v1245_v25  ;;  %v1247_v32 = vpop.eup %1246 }
  0xc8   : > { %v510_v31 = vpop.f32.mrf.mxu3  ;;  %v1249_v33 = vpop.eup %1248  ;;  %v521_v37 = vmul.f32 %v1247_v32, %v519_v16  ;;  %vm526_vm0 = vweird.f32 %v1247_v32 }
  0xc9   : > { %1250 = vrcp.f32 %v557_v28  ;;  %v540_v39 = vmul.f32 %v1249_v33, %v538_v17  ;;  %vm545_vm1 = vweird.f32 %v1249_v33  ;;  %vm527_vm3 = vmor %vm525_vm2, %vm526_vm0  ;;  %v569_v17 = vand.u32 2147483648, %v557_v28 }
  0xca   : > { %v522_v45 = vsub.f32 1.0, %v521_v37  ;;  %1252 = vtanh.f32 %v515_v29  ;;  %vm546_vm6 = vmor %vm544_vm4, %vm545_vm1  ;;  %vm563_vm9 = vweird.f32 %v557_v28 }
  0xcb   : > { %v541_v49 = vsub.f32 1.0, %v540_v39  ;;  %v570_v39 = vor.u32 1.1754944e-38, %v569_v17 }
  0xcc   : > { %v523_v51 = vmul.f32 %v1247_v32, %v522_v45 }
  0xcd   : > { %v542_v54 = vmul.f32 %v1249_v33, %v541_v49 }
  0xce   : > { %v524_v61 = vadd.f32 %v1247_v32, %v523_v51 }
  0xcf   : > { %v1251_v58 = vpop.eup %1250  ;;  %v543_v1 = vadd.f32 %v1249_v33, %v542_v54 }
  0xd0   : > { %v559_v63 = vmul.f32 %v1251_v58, %v557_v28  ;;  %v1253_v2 = vpop.eup %1252  ;;  %v528_v6 = vsel %vm527_vm3, %v1247_v32, %v524_v61  ;;  %vm564_vm8 = vweird.f32 %v1251_v58  ;;  %v567_v32 = vand.u32 2147483647, %v557_v28 }
  0xd1   : > { %v533_v13 = vsel %vm530_vm5, %v532_v62, %v528_v6  ;;  %v547_v15 = vsel %vm546_vm6, %v1249_v33, %v543_v1  ;;  %vm565_vm10 = vmor %vm563_vm9, %vm564_vm8 }
  0xd2   : > { %v560_v12 = vsub.f32 1.0, %v559_v63  ;;  %v552_v16 = vsel %vm549_vm7, %v551_v7, %v547_v15  ;;  %v574_v20 = vmul.f32 %v533_v13, %v294_v0  ;;  %vm568_vm11 = vcmp.eq.f32.partialorder %v567_v32, 8.507059e+37 }
  0xd3   : > { %v575_v25 = vmul.f32 %v1253_v2, %v552_v16 }
  0xd4   : > { %v561_v24 = vmul.f32 %v1251_v58, %v560_v12 }
  0xd5   : > { %v1739_v29 = vadd.f32 %v575_v25, %v574_v20 }
  0xd6   : > { %v562_v31 = vadd.f32 %v1251_v58, %v561_v24 }
  0xd7   : > { %1254 = vtanh.f32 %v1739_v29 }
  0xd8   : > { %v566_v37 = vsel %vm565_vm10, %v1251_v58, %v562_v31 }
  0xd9   : > { %v571_v45 = vsel %vm568_vm11, %v570_v39, %v566_v37 }
  0xdd   : > { %v1255_v33 = vpop.eup %1254 }
  0xde   : > { %v578_v46 = vmul.f32 %v1255_v33, %v571_v45 }
  0xe0   : > { %579 = vst [vmem:[%s1363_s7] sm:$0xff] %v578_v46  ;;  %v585_v49 = vpack.c.bf16 %v578_v46, %v578_v46  ;;  %v1181_v46 = vld [vmem:[%s1358_s28 + $0x40] sm:$0xff] }
  0xe2   : > { %594 = vmatmul.bf16.vlgmr.msrb.gmra.mxu0 %v585_v49  ;;  %607 = vmatmul.bf16.vlgmr.msrb.gmra.mxu1 %v585_v49 }
  0xe3   : > { %620 = vmatmul.bf16.vlgmr.msrb.gmra.mxu2 %v585_v49  ;;  %633 = vmatmul.bf16.vlgmr.msrb.gmra.mxu3 %v585_v49  ;;  %v1182_v49 = vld [vmem:[%s1358_s28 + $0x48] sm:$0xff] }
  0xe4   : > { %840 = vmatpush.bf16.msrb.mxu0 %v1386_v5  ;;  %853 = vmatpush.bf16.msrb.mxu1 %v1397_v9  ;;  %v1173_v5 = vld [vmem:[%s1358_s28 + $0x20] sm:$0xff]  ;;  %v1174_v9 = vld [vmem:[%s1358_s28 + $0x28] sm:$0xff] }
  0xe5   : > { %866 = vmatpush.bf16.msrb.mxu2 %v1399_v10  ;;  %879 = vmatpush.bf16.msrb.mxu3 %v1437_v23 }
  0xe8   : > { %841 = vmatpush.bf16.msrb.mxu0 %v1411_v14  ;;  %854 = vmatpush.bf16.msrb.mxu1 %v1424_v18 }
  0xe9   : > { %867 = vmatpush.bf16.msrb.mxu2 %v1426_v19  ;;  %880 = vmatpush.bf16.msrb.mxu3 %v1476_v36 }
  0xec   : > { %842 = vmatpush.bf16.msrb.mxu0 %v1459_v30  ;;  %855 = vmatpush.bf16.msrb.mxu1 %v1472_v34  ;;  %v1175_v34 = vld [vmem:[%s1358_s28 + $0x30] sm:$0xff] }
  0xed   : > { %868 = vmatpush.bf16.msrb.mxu2 %v1474_v35  ;;  %881 = vmatpush.bf16.msrb.mxu3 %v1500_v44 }
  0xf0   : > { %843 = vmatpush.bf16.msrb.mxu0 %v1498_v43  ;;  %856 = vmatpush.bf16.msrb.mxu1 %v1510_v47 }
  0xf1   : > { %869 = vmatpush.bf16.msrb.mxu2 %v1512_v48  ;;  %882 = vmatpush.bf16.msrb.mxu3 %v1536_v56 }
  0xf4   : > { %844 = vmatpush.bf16.msrb.mxu0 %v1534_v55  ;;  %857 = vmatpush.bf16.msrb.mxu1 %v1546_v59 }
  0xf5   : > { %870 = vmatpush.bf16.msrb.mxu2 %v1548_v60  ;;  %883 = vmatpush.bf16.msrb.mxu3 %v1572_v4 }
  0xf8   : > { %845 = vmatpush.bf16.msrb.mxu0 %v1570_v3  ;;  %858 = vmatpush.bf16.msrb.mxu1 %v1582_v8  ;;  %v1176_v8 = vld [vmem:[%s1358_s28 + $0x38] sm:$0xff] }
  0xf9   : > { %871 = vmatpush.bf16.msrb.mxu2 %v1584_v11  ;;  %884 = vmatpush.bf16.msrb.mxu3 %v1608_v22 }
  0xfc   : > { %846 = vmatpush.bf16.msrb.mxu0 %v1606_v21  ;;  %859 = vmatpush.bf16.msrb.mxu1 %v1618_v26 }
  0xfd   : > { %872 = vmatpush.bf16.msrb.mxu2 %v1620_v27  ;;  %885 = vmatpush.bf16.msrb.mxu3 %v1647_v40 }
 0x100   : > { %847 = vmatpush.bf16.msrb.mxu0 %v1642_v38  ;;  %860 = vmatpush.bf16.msrb.mxu1 %v1651_v41 }
 0x101   : > { %873 = vmatpush.bf16.msrb.mxu2 %v1653_v42  ;;  %886 = vmatpush.bf16.msrb.mxu3 %v1665_v50 }
 0x15f   : > { %v595_v10 = vpop.f32.mrf.mxu0  ;;  %v608_v14 = vpop.f32.mrf.mxu1 }
 0x160   : > { %v638_v18 = vadd.f32 %v1173_v5, %v595_v10  ;;  %v639_v19 = vadd.f32 %v1174_v9, %v608_v14 }
 0x162   : > { %v1177_v23 = vmul.f32 -1.442695, %v638_v18  ;;  %v1178_v30 = vmul.f32 -1.442695, %v639_v19 }
 0x164   : > { %1256 = vpow2.f32 %v1177_v23  ;;  %v1183_v23 = vld [vmem:[%s1358_s28 + $0x50] sm:$0xff] }
 0x165   : > { %1258 = vpow2.f32 %v1178_v30 }
 0x166   : > { %v621_v35 = vpop.f32.mrf.mxu2  ;;  %v634_v36 = vpop.f32.mrf.mxu3 }
 0x167   : > { %v640_v43 = vadd.f32 %v1175_v34, %v621_v35  ;;  %v597_v44 = vpop.f32.mrf.mxu0  ;;  %v610_v47 = vpop.f32.mrf.mxu1  ;;  %v641_v26 = vadd.f32 %v1176_v8, %v634_v36 }
 0x169   : > { %v1179_v48 = vmul.f32 -1.442695, %v640_v43 }
 0x16a   : > { %v1257_v55 = vpop.eup %1256 }
 0x16b   : > { %v1259_v56 = vpop.eup %1258  ;;  %v645_v59 = vadd.f32 1.0, %v1257_v55  ;;  %1260 = vpow2.f32 %v1179_v48 }
 0x16c   : > { %v664_v60 = vadd.f32 1.0, %v1259_v56 }
 0x16d   : > { %1262 = vrcp.f32 %v645_v59  ;;  %v657_v42 = vand.u32 2147483648, %v645_v59  ;;  %v655_v51 = vand.u32 2147483647, %v645_v59  ;;  %vm651_vm14 = vweird.f32 %v645_v59 }
 0x16e   : > { %1264 = vrcp.f32 %v664_v60  ;;  %v623_v3 = vpop.f32.mrf.mxu2  ;;  %v636_v4 = vpop.f32.mrf.mxu3  ;;  %v676_v52 = vand.u32 2147483648, %v664_v60  ;;  %v674_v54 = vand.u32 2147483647, %v664_v60  ;;  %vm670_vm0 = vweird.f32 %v664_v60 }
 0x16f   : > { %v658_v61 = vor.u32 1.1754944e-38, %v657_v42  ;;  %vm656_vm1 = vcmp.eq.f32.partialorder %v655_v51, 8.507059e+37  ;;  %v1184_v3 = vld [vmem:[%s1358_s28 + $0x58] sm:$0xff] }
 0x170   : > { %v677_v1 = vor.u32 1.1754944e-38, %v676_v52  ;;  %vm675_vm3 = vcmp.eq.f32.partialorder %v674_v54, 8.507059e+37 }
 0x171   : > { %v1261_v11 = vpop.eup %1260 }
 0x172   : > { %v683_v21 = vadd.f32 1.0, %v1261_v11 }
 0x173   : > { %v1263_v22 = vpop.eup %1262 }
 0x174   : > { %v1265_v27 = vpop.eup %1264  ;;  %v647_v38 = vmul.f32 %v1263_v22, %v645_v59  ;;  %1266 = vrcp.f32 %v683_v21  ;;  %vm652_vm12 = vweird.f32 %v1263_v22  ;;  %v695_v31 = vand.u32 2147483648, %v683_v21 }
 0x175   : > { %v666_v40 = vmul.f32 %v1265_v27, %v664_v60  ;;  %1268 = vtanh.f32 %v641_v26  ;;  %vm671_vm13 = vweird.f32 %v1265_v27  ;;  %vm653_vm15 = vmor %vm651_vm14, %vm652_vm12  ;;  %vm689_vm5 = vweird.f32 %v683_v21 }
 0x176   : > { %v648_v41 = vsub.f32 1.0, %v647_v38  ;;  %vm672_vm2 = vmor %vm670_vm0, %vm671_vm13  ;;  %v693_v17 = vand.u32 2147483647, %v683_v21  ;;  %v696_v37 = vor.u32 1.1754944e-38, %v695_v31 }
 0x177   : > { %v667_v50 = vsub.f32 1.0, %v666_v40 }
 0x178   : > { %v649_v28 = vmul.f32 %v1263_v22, %v648_v41  ;;  %vm694_vm7 = vcmp.eq.f32.partialorder %v693_v17, 8.507059e+37 }
 0x179   : > { %v668_v53 = vmul.f32 %v1265_v27, %v667_v50 }
 0x17a   : > { %v1267_v57 = vpop.eup %1266  ;;  %v650_v58 = vadd.f32 %v1263_v22, %v649_v28 }
 0x17b   : > { %v685_v62 = vmul.f32 %v1267_v57, %v683_v21  ;;  %v669_v63 = vadd.f32 %v1265_v27, %v668_v53  ;;  %v1269_v2 = vpop.eup %1268  ;;  %vm690_vm4 = vweird.f32 %v1267_v57 }
 0x17c   : > { %v654_v0 = vsel %vm653_vm15, %v1263_v22, %v650_v58  ;;  %vm691_vm6 = vmor %vm689_vm5, %vm690_vm4 }
 0x17d   : > { %v686_v6 = vsub.f32 1.0, %v685_v62  ;;  %v659_v7 = vsel %vm656_vm1, %v658_v61, %v654_v0  ;;  %v673_v12 = vsel %vm672_vm2, %v1265_v27, %v669_v63 }
 0x17e   : > { %v678_v13 = vsel %vm675_vm3, %v677_v1, %v673_v12  ;;  %v700_v15 = vmul.f32 %v659_v7, %v1739_v29 }
 0x17f   : > { %v687_v16 = vmul.f32 %v1267_v57, %v686_v6  ;;  %v701_v20 = vmul.f32 %v1269_v2, %v678_v13 }
 0x181   : > { %v1780_v24 = vadd.f32 %v701_v20, %v700_v15  ;;  %v688_v25 = vadd.f32 %v1267_v57, %v687_v16 }
 0x183   : > { %1270 = vtanh.f32 %v1780_v24  ;;  %v692_v32 = vsel %vm691_vm6, %v1267_v57, %v688_v25 }
 0x184   : > { %v697_v29 = vsel %vm694_vm7, %v696_v37, %v692_v32 }
 0x189   : > { %v1271_v39 = vpop.eup %1270 }
 0x18a   : > { %v704_v33 = vmul.f32 %v1271_v39, %v697_v29 }
 0x18c   : > { %1180 = vst [vmem:[%s1363_s7 + $0x8] sm:$0xff] %v704_v33  ;;  %v712_v45 = vpack.c.bf16 %v704_v33, %v704_v33  ;;  %v1189_v33 = vld [vmem:[%s1358_s28 + $0x60] sm:$0xff] }
 0x18e   : > { %721 = vmatmul.bf16.vlgmr.msra.gmra.mxu0 %v712_v45  ;;  %734 = vmatmul.bf16.vlgmr.msra.gmra.mxu1 %v712_v45 }
 0x18f   : > { %747 = vmatmul.bf16.vlgmr.msra.gmra.mxu2 %v712_v45  ;;  %760 = vmatmul.bf16.vlgmr.msra.gmra.mxu3 %v712_v45  ;;  %v1190_v45 = vld [vmem:[%s1358_s28 + $0x68] sm:$0xff] }
 0x20b   : > { %v722_v5 = vpop.f32.mrf.mxu0  ;;  %v735_v9 = vpop.f32.mrf.mxu1 }
 0x20c   : > { %v765_v10 = vadd.f32 %v1181_v46, %v722_v5  ;;  %v766_v14 = vadd.f32 %v1182_v49, %v735_v9 }
 0x20e   : > { %v1185_v18 = vmul.f32 -1.442695, %v765_v10  ;;  %v1186_v19 = vmul.f32 -1.442695, %v766_v14 }
 0x210   : > { %1272 = vpow2.f32 %v1185_v18  ;;  %v1191_v18 = vld [vmem:[%s1358_s28 + $0x70] sm:$0xff] }
 0x211   : > { %1274 = vpow2.f32 %v1186_v19 }
 0x212   : > { %v748_v30 = vpop.f32.mrf.mxu2  ;;  %v761_v34 = vpop.f32.mrf.mxu3 }
 0x213   : > { %v767_v35 = vadd.f32 %v1183_v23, %v748_v30  ;;  %v724_v36 = vpop.f32.mrf.mxu0  ;;  %v737_v43 = vpop.f32.mrf.mxu1  ;;  %v768_v21 = vadd.f32 %v1184_v3, %v761_v34 }
 0x215   : > { %v1187_v44 = vmul.f32 -1.442695, %v767_v35 }
 0x216   : > { %v1273_v47 = vpop.eup %1272 }
 0x217   : > { %v1275_v48 = vpop.eup %1274  ;;  %v772_v55 = vadd.f32 1.0, %v1273_v47  ;;  %1276 = vpow2.f32 %v1187_v44 }
 0x218   : > { %v791_v56 = vadd.f32 1.0, %v1275_v48 }
 0x219   : > { %1278 = vrcp.f32 %v772_v55  ;;  %v784_v40 = vand.u32 2147483648, %v772_v55  ;;  %v782_v50 = vand.u32 2147483647, %v772_v55  ;;  %vm778_vm10 = vweird.f32 %v772_v55 }
 0x21a   : > { %1280 = vrcp.f32 %v791_v56  ;;  %v750_v59 = vpop.f32.mrf.mxu2  ;;  %v763_v60 = vpop.f32.mrf.mxu3  ;;  %v803_v28 = vand.u32 2147483648, %v791_v56  ;;  %v801_v52 = vand.u32 2147483647, %v791_v56  ;;  %vm797_vm12 = vweird.f32 %v791_v56 }
 0x21b   : > { %v785_v57 = vor.u32 1.1754944e-38, %v784_v40  ;;  %vm783_vm13 = vcmp.eq.f32.partialorder %v782_v50, 8.507059e+37  ;;  %v1192_v59 = vld [vmem:[%s1358_s28 + $0x78] sm:$0xff] }
 0x21c   : > { %v804_v63 = vor.u32 1.1754944e-38, %v803_v28  ;;  %vm802_vm15 = vcmp.eq.f32.partialorder %v801_v52, 8.507059e+37 }
 0x21d   : > { %v1277_v4 = vpop.eup %1276 }
 0x21e   : > { %v810_v8 = vadd.f32 1.0, %v1277_v4 }
 0x21f   : > { %v1279_v11 = vpop.eup %1278 }
 0x220   : > { %v1281_v22 = vpop.eup %1280  ;;  %v774_v26 = vmul.f32 %v1279_v11, %v772_v55  ;;  %1282 = vrcp.f32 %v810_v8  ;;  %vm779_vm8 = vweird.f32 %v1279_v11  ;;  %v822_v25 = vand.u32 2147483648, %v810_v8 }
 0x221   : > { %v793_v27 = vmul.f32 %v1281_v22, %v791_v56  ;;  %1284 = vtanh.f32 %v768_v21  ;;  %vm798_vm9 = vweird.f32 %v1281_v22  ;;  %vm780_vm11 = vmor %vm778_vm10, %vm779_vm8  ;;  %vm816_vm1 = vweird.f32 %v810_v8 }
 0x222   : > { %v775_v38 = vsub.f32 1.0, %v774_v26  ;;  %vm799_vm14 = vmor %vm797_vm12, %vm798_vm9  ;;  %v820_v31 = vand.u32 2147483647, %v810_v8  ;;  %v823_v32 = vor.u32 1.1754944e-38, %v822_v25 }
 0x223   : > { %v794_v41 = vsub.f32 1.0, %v793_v27 }
 0x224   : > { %v776_v42 = vmul.f32 %v1279_v11, %v775_v38  ;;  %vm821_vm3 = vcmp.eq.f32.partialorder %v820_v31, 8.507059e+37 }
 0x225   : > { %v795_v51 = vmul.f32 %v1281_v22, %v794_v41 }
 0x226   : > { %v1283_v53 = vpop.eup %1282  ;;  %v777_v54 = vadd.f32 %v1279_v11, %v776_v42 }
 0x227   : > { %v812_v58 = vmul.f32 %v1283_v53, %v810_v8  ;;  %v796_v61 = vadd.f32 %v1281_v22, %v795_v51  ;;  %v1285_v0 = vpop.eup %1284  ;;  %vm817_vm0 = vweird.f32 %v1283_v53 }
 0x228   : > { %v781_v62 = vsel %vm780_vm11, %v1279_v11, %v777_v54  ;;  %vm818_vm2 = vmor %vm816_vm1, %vm817_vm0 }
 0x229   : > { %v813_v1 = vsub.f32 1.0, %v812_v58  ;;  %v786_v2 = vsel %vm783_vm13, %v785_v57, %v781_v62  ;;  %v800_v6 = vsel %vm799_vm14, %v1281_v22, %v796_v61 }
 0x22a   : > { %v805_v7 = vsel %vm802_vm15, %v804_v63, %v800_v6  ;;  %v827_v12 = vmul.f32 %v786_v2, %v1780_v24 }
 0x22b   : > { %v814_v13 = vmul.f32 %v1283_v53, %v813_v1  ;;  %v828_v15 = vmul.f32 %v1285_v0, %v805_v7 }
 0x22d   : > { %v1789_v16 = vadd.f32 %v828_v15, %v827_v12  ;;  %v815_v20 = vadd.f32 %v1283_v53, %v814_v13 }
 0x22f   : > { %1286 = vtanh.f32 %v1789_v16  ;;  %v819_v17 = vsel %vm818_vm2, %v1283_v53, %v815_v20 }
 0x230   : > { %v824_v24 = vsel %vm821_vm3, %v823_v32, %v819_v17 }
 0x235   : > { %v1287_v37 = vpop.eup %1286 }
 0x236   : > { %v831_v39 = vmul.f32 %v1287_v37, %v824_v24 }
 0x238   : > { %1188 = vst [vmem:[%s1363_s7 + $0x10] sm:$0xff] %v831_v39  ;;  %v839_v29 = vpack.c.bf16 %v831_v39, %v831_v39 }
 0x23a   : > { %848 = vmatmul.bf16.vlgmr.msrb.gmra.mxu0 %v839_v29  ;;  %861 = vmatmul.bf16.vlgmr.msrb.gmra.mxu1 %v839_v29 }
 0x23b   : > { %874 = vmatmul.bf16.vlgmr.msrb.gmra.mxu2 %v839_v29  ;;  %887 = vmatmul.bf16.vlgmr.msrb.gmra.mxu3 %v839_v29 }
 0x2b7   : > { %v849_v46 = vpop.f32.mrf.mxu0  ;;  %v862_v49 = vpop.f32.mrf.mxu1 }
 0x2b8   : > { %v892_v5 = vadd.f32 %v1189_v33, %v849_v46  ;;  %v893_v9 = vadd.f32 %v1190_v45, %v862_v49 }
 0x2ba   : > { %v1193_v10 = vmul.f32 -1.442695, %v892_v5  ;;  %v1194_v14 = vmul.f32 -1.442695, %v893_v9 }
 0x2bc   : > { %1288 = vpow2.f32 %v1193_v10 }
 0x2bd   : > { %1290 = vpow2.f32 %v1194_v14 }
 0x2be   : > { %v875_v19 = vpop.f32.mrf.mxu2  ;;  %v888_v23 = vpop.f32.mrf.mxu3 }
 0x2bf   : > { %v894_v30 = vadd.f32 %v1191_v18, %v875_v19  ;;  %v851_v34 = vpop.f32.mrf.mxu0  ;;  %v864_v35 = vpop.f32.mrf.mxu1  ;;  %v895_v8 = vadd.f32 %v1192_v59, %v888_v23 }
 0x2c1   : > { %v1195_v36 = vmul.f32 -1.442695, %v894_v30 }
 0x2c2   : > { %v1289_v43 = vpop.eup %1288 }
 0x2c3   : > { %v1291_v44 = vpop.eup %1290  ;;  %v899_v47 = vadd.f32 1.0, %v1289_v43  ;;  %1292 = vpow2.f32 %v1195_v36 }
 0x2c4   : > { %v918_v48 = vadd.f32 1.0, %v1291_v44 }
 0x2c5   : > { %1294 = vrcp.f32 %v899_v47  ;;  %v911_v27 = vand.u32 2147483648, %v899_v47  ;;  %v909_v41 = vand.u32 2147483647, %v899_v47  ;;  %vm905_vm6 = vweird.f32 %v899_v47 }
 0x2c6   : > { %1296 = vrcp.f32 %v918_v48  ;;  %v877_v55 = vpop.f32.mrf.mxu2  ;;  %v890_v56 = vpop.f32.mrf.mxu3  ;;  %v930_v42 = vand.u32 2147483648, %v918_v48  ;;  %v928_v28 = vand.u32 2147483647, %v918_v48  ;;  %vm924_vm8 = vweird.f32 %v918_v48 }
 0x2c7   : > { %v912_v53 = vor.u32 1.1754944e-38, %v911_v27  ;;  %vm910_vm9 = vcmp.eq.f32.partialorder %v909_v41, 8.507059e+37 }
 0x2c8   : > { %v931_v61 = vor.u32 1.1754944e-38, %v930_v42  ;;  %vm929_vm11 = vcmp.eq.f32.partialorder %v928_v28, 8.507059e+37 }
 0x2c9   : > { %v1293_v60 = vpop.eup %1292 }
 0x2ca   : > { %v937_v3 = vadd.f32 1.0, %v1293_v60 }
 0x2cb   : > { %v1295_v4 = vpop.eup %1294 }
 0x2cc   : > { %v1297_v11 = vpop.eup %1296  ;;  %v901_v21 = vmul.f32 %v1295_v4, %v899_v47  ;;  %1298 = vrcp.f32 %v937_v3  ;;  %vm906_vm4 = vweird.f32 %v1295_v4  ;;  %v949_v20 = vand.u32 2147483648, %v937_v3 }
 0x2cd   : > { %v920_v22 = vmul.f32 %v1297_v11, %v918_v48  ;;  %1300 = vtanh.f32 %v895_v8  ;;  %vm925_vm5 = vweird.f32 %v1297_v11  ;;  %vm907_vm7 = vmor %vm905_vm6, %vm906_vm4  ;;  %vm943_vm13 = vweird.f32 %v937_v3 }
 0x2ce   : > { %v902_v26 = vsub.f32 1.0, %v901_v21  ;;  %vm926_vm10 = vmor %vm924_vm8, %vm925_vm5  ;;  %v947_v25 = vand.u32 2147483647, %v937_v3  ;;  %v950_v17 = vor.u32 1.1754944e-38, %v949_v20 }
 0x2cf   : > { %v921_v38 = vsub.f32 1.0, %v920_v22 }
 0x2d0   : > { %v903_v40 = vmul.f32 %v1295_v4, %v902_v26  ;;  %vm948_vm15 = vcmp.eq.f32.partialorder %v947_v25, 8.507059e+37 }
 0x2d1   : > { %v922_v50 = vmul.f32 %v1297_v11, %v921_v38 }
 0x2d2   : > { %v1299_v51 = vpop.eup %1298  ;;  %v904_v52 = vadd.f32 %v1295_v4, %v903_v40 }
 0x2d3   : > { %v939_v54 = vmul.f32 %v1299_v51, %v937_v3  ;;  %v923_v57 = vadd.f32 %v1297_v11, %v922_v50  ;;  %v1301_v62 = vpop.eup %1300  ;;  %vm944_vm12 = vweird.f32 %v1299_v51 }
 0x2d4   : > { %v908_v58 = vsel %vm907_vm7, %v1295_v4, %v904_v52  ;;  %vm945_vm14 = vmor %vm943_vm13, %vm944_vm12 }
 0x2d5   : > { %v940_v63 = vsub.f32 1.0, %v939_v54  ;;  %v913_v0 = vsel %vm910_vm9, %v912_v53, %v908_v58  ;;  %v927_v1 = vsel %vm926_vm10, %v1297_v11, %v923_v57 }
 0x2d6   : > { %v932_v2 = vsel %vm929_vm11, %v931_v61, %v927_v1  ;;  %v954_v6 = vmul.f32 %v913_v0, %v1789_v16 }
 0x2d7   : > { %v941_v7 = vmul.f32 %v1299_v51, %v940_v63  ;;  %v955_v12 = vmul.f32 %v1301_v62, %v932_v2 }
 0x2d9   : > { %v956_v13 = vadd.f32 %v955_v12, %v954_v6  ;;  %v942_v15 = vadd.f32 %v1299_v51, %v941_v7 }
 0x2db   : > { %1302 = vtanh.f32 %v956_v13  ;;  %962 = vst [vmem:[%s1814_s6] sm:$0xff] %v956_v13  ;;  %v946_v31 = vsel %vm945_vm14, %v1299_v51, %v942_v15 }
 0x2dc   : > { %v951_v16 = vsel %vm948_vm15, %v950_v17, %v946_v31 }
 0x2e1   : > { %v1303_v32 = vpop.eup %1302 }
 0x2e2   : > { %v958_v37 = vmul.f32 %v1303_v32, %v951_v16 }
 0x2e4   : > { %1196 = vst [vmem:[%s1363_s7 + $0x18] sm:$0xff] %v958_v37 }
 0x2e5   : > { %961 = vst [vmem:[%s1813_s5] sm:$0xff] %v958_v37 }
 0x2e6 PF: > { %s17_s21 = sadd.s32 1, %s1310_s21  }
 0x2e7   : > { %p14_p5 = scmp.ge.s32.totalorder %s17_s21, 4  }
 0x2e9   :  { %16 = sbr.rel (!%p14_p5) target bundleno = 1 (0x1), region = 92 }

</bundles_post_ra>
